<compile_context>
chip_gen: v7x
topology: tpu7x:2x2x1
jax: 0.10.0
libtpu: 0.0.40
codegen_flags: <defaults>
</compile_context>

<pallas_src>
import numpy as np
import jax
import jax.numpy as jnp
from jax import lax
from jax.experimental import pallas as pl
from jax.experimental.pallas import tpu as pltpu

# ----------------------- configuration (small synthetic shapes) -----------------------
N      = 60                      # number of non-empty octree nodes at this depth
C      = 32                      # dim
H      = 2                       # num_heads
CH     = C // H                  # head dim
K      = 8                       # patch_size
DIL    = 2                       # dilation (D > 1 path of OctreeAttention)
HID    = int(C * 4.0)            # mlp hidden
KTAPS  = 27                      # 3x3x3 octree depthwise conv taps
DEPTH  = 4
BATCH  = 2                       # octree batch_size
EPS    = 1e-5                    # LayerNorm / BatchNorm eps (torch default)
BLOCK  = K * DIL
N_A    = ((N + BLOCK - 1) // BLOCK) * BLOCK     # padded token count (patch_partition)
NPATCH = N_A // K                               # number of attention patches
SCALE  = float(CH) ** -0.5
POS_BND = int(0.8 * K * DIL ** 0.5)             # RPE.get_pos_bnd
RPE_NUM = 2 * POS_BND + 1

# Token tiling: PPT patches (= TM token rows) per grid step.  At production octree sizes
# use PPT_TARGET ~ 32-64 (>=256 token rows) to feed the MXU; the toy shape uses 4 so the
# grid (and the "parallel" megacore split on v7x) is actually exercised (grid=(2,)).
PPT_TARGET = 4
PPT = max(d for d in range(1, NPATCH + 1) if NPATCH % d == 0 and d <= PPT_TARGET)
TM  = PPT * K


def _gelu(x):
    # torch.nn.GELU default = exact erf-based gelu
    return 0.5 * x * (1.0 + lax.erf(x * (1.0 / float(np.sqrt(2.0)))))


def _layernorm(x, w, b):
    mu = jnp.mean(x, axis=-1, keepdims=True)
    v = jnp.mean((x - mu) ** 2, axis=-1, keepdims=True)
    return (x - mu) * lax.rsqrt(v + EPS) * w + b


# ----------------------------------- fused Pallas kernel -----------------------------------
def octformer_block_kernel(conv_ref, data_ref, bnsc_ref, bnsh_ref,
                           ln1w_ref, ln1b_ref, wqkv_ref, bqkv_ref, bias_ref,
                           wproj_ref, bproj_ref, ln2w_ref, ln2b_ref,
                           w1_ref, b1_ref, w2_ref, b2_ref, out_ref):
    # ---- cpe: BatchNorm (stats precomputed in wrapper, folded into scale/shift) + residual ----
    data1 = conv_ref[...] * bnsc_ref[...] + bnsh_ref[...] + data_ref[...]   # (TM, C)

    # ---- norm1 (f32) ----
    xn1 = _layernorm(data1, ln1w_ref[...], ln1b_ref[...])

    # ---- OctreeAttention: one QKV matmul (bf16 operands, f32 acc) ----
    qkv = jnp.dot(xn1.astype(jnp.bfloat16), wqkv_ref[...],
                  preferred_element_type=jnp.float32) + bqkv_ref[...]        # (TM, 3C)
    bias = bias_ref[...]                                                     # (H, PPT, K, K)

    heads = []
    for h in range(H):                                                       # H = 2, unrolled
        # attention scale is folded into the Q columns of the qkv weight/bias
        q = qkv[:, h * CH:(h + 1) * CH].reshape(PPT, K, CH)
        k = qkv[:, C + h * CH:C + (h + 1) * CH].reshape(PPT, K, CH)
        v = qkv[:, 2 * C + h * CH:2 * C + (h + 1) * CH].reshape(PPT, K, CH)
        # block-diagonal (per-patch) scores: (PPT, K, K)
        s = lax.dot_general(q.astype(jnp.bfloat16), k.astype(jnp.bfloat16),
                            (((2,), (2,)), ((0,), (0,))),
                            preferred_element_type=jnp.float32) + bias[h]
        m = jnp.max(s, axis=-1, keepdims=True)
        e = jnp.exp(s - m)                                                   # masked keys -> 0
        p = e * pl.reciprocal(jnp.sum(e, axis=-1, keepdims=True), approx=True)
        oh = lax.dot_general(p.astype(jnp.bfloat16), v.astype(jnp.bfloat16),
                             (((2,), (1,)), ((0,), (0,))),
                             preferred_element_type=jnp.float32)             # (PPT, K, CH)
        heads.append(oh.reshape(TM, CH))

    # heads concatenated along lanes -> ONE output-projection matmul
    attn_cat = jnp.concatenate(heads, axis=-1)                               # (TM, C)
    attn_o = jnp.dot(attn_cat.astype(jnp.bfloat16), wproj_ref[...],
                     preferred_element_type=jnp.float32) + bproj_ref[...]

    # ---- residual + norm2 + MLP + residual (drop_path p=0 -> identity) ----
    data2 = data1 + attn_o
    xn2 = _layernorm(data2, ln2w_ref[...], ln2b_ref[...])
    hdn = _gelu(jnp.dot(xn2.astype(jnp.bfloat16), w1_ref[...],
                        preferred_element_type=jnp.float32) + b1_ref[...])
    y = jnp.dot(hdn.astype(jnp.bfloat16), w2_ref[...],
                preferred_element_type=jnp.float32) + b2_ref[...]
    # NOTE: C=32 -> this store is 32/128 lanes wide; a lane-dense repack would need an
    # in-kernel relayout, which is deliberately avoided for lowering robustness.
    out_ref[...] = data2 + y


# ------------------------------------ glue helpers -------------------------------------
def gather_neighbors(data, nbr):
    # glue: sparse-octree neighbor gather, tap-major so each tap is a contiguous (N, C) slab
    valid = (nbr >= 0).T                              # (KTAPS, N)
    idx = jnp.where(valid, nbr.T, 0)
    g = data[idx]                                     # (KTAPS, N, C)
    return jnp.where(valid[..., None], g, 0.0)


def build_octree_aux(batch_id, xyz):
    # Mirrors OctreeT.build_batch_idx / build_attn_mask / build_rel_pos (dilated path).
    pad = N_A - N
    batch_pad = jnp.concatenate([batch_id, jnp.full((pad,), BATCH, jnp.int32)])
    xyz_pad = jnp.concatenate([xyz, jnp.zeros((pad, 3), jnp.int32)])
    b = batch_pad.reshape(-1, K, DIL).transpose(0, 2, 1).reshape(-1, K)     # (NPATCH, K)
    diff = (b[:, :, None] - b[:, None, :]).astype(jnp.float32)
    dilate_mask = jnp.where(diff != 0, -1000.0, 0.0)                        # (NPATCH, K, K)
    xz = xyz_pad.reshape(-1, K, DIL, 3).transpose(0, 2, 1, 3).reshape(-1, K, 3)
    dilate_pos = xz[:, :, None, :] - xz[:, None, :, :]                      # (NPATCH, K, K, 3)
    return dilate_mask, dilate_pos


def rpe_bias(rel_pos, table):
    # RPE.forward: clamp -> table lookup (3 axes) -> sum -> (B, H, K, K)
    mul = jnp.arange(3, dtype=jnp.int32) * RPE_NUM
    idx = jnp.clip(rel_pos, -POS_BND, POS_BND) + POS_BND + mul              # (B, K, K, 3)
    out = table[idx]                                                        # (B, K, K, 3, H)
    out = out.sum(axis=3)                                                   # (B, K, K, H)
    return out.transpose(0, 3, 1, 2)                                        # (B, H, K, K)


def build_patch_bias(rel_pos, mask, rpe_tab):
    # Per-patch (RPE + batch-mask) bias, head-major: (H, NPATCH, K, K).  No dense slab.
    bp = rpe_bias(rel_pos, rpe_tab) + mask[:, None, :, :]                   # (NPATCH, H, K, K)
    return bp.transpose(1, 0, 2, 3)                                         # (H, NPATCH, K, K)


def prepare_params(p):
    # one-time prep: transposes, bias reshapes, attention scale folded into qkv Q columns,
    # MXU weight operands pre-cast to bf16 (biases / norm params stay f32).
    qscale = jnp.concatenate([jnp.full((C,), SCALE, jnp.float32),
                              jnp.ones((2 * C,), jnp.float32)])
    return {
        "w_dw":    p["w_dw"],                                        # (KTAPS, C), wrapper-side
        "bn_w":    p["bn_w"][None], "bn_b": p["bn_b"][None],
        "ln1_w":   p["ln1_w"][None], "ln1_b": p["ln1_b"][None],
        "wqkv_t":  (p["wqkv"].T * qscale[None, :]).astype(jnp.bfloat16),   # (C, 3C)
        "bqkv":    (p["bqkv"] * qscale)[None],                             # (1, 3C)
        "wproj_t": p["wproj"].T.astype(jnp.bfloat16),                      # (C, C)
        "bproj":   p["bproj"][None],
        "rpe_tab": p["rpe_tab"],
        "ln2_w":   p["ln2_w"][None], "ln2_b": p["ln2_b"][None],
        "w1_t":    p["w1"].T.astype(jnp.bfloat16), "b1": p["b1"][None],    # (C, HID), (1, HID)
        "w2_t":    p["w2"].T.astype(jnp.bfloat16), "b2": p["b2"][None],    # (HID, C), (1, C)
    }


# ------------------------------------ full forward --------------------------------------
def octformer_block_pallas(pp, data, nbr, mask, rel_pos):
    pad = N_A - N
    # dilated-order permutation (patch_partition + D>1 re-order), applied to the INPUTS
    perm = jnp.arange(N_A).reshape(-1, K, DIL).transpose(0, 2, 1).reshape(N_A)
    inv_perm = jnp.arange(N_A).reshape(-1, DIL, K).transpose(0, 2, 1).reshape(N_A)

    # OctreeDWConv: gather + tap reduce in the wrapper (XLA fuses it); only (N, C) survives.
    xg = gather_neighbors(data, nbr)                                        # (KTAPS, N, C)
    conv = jnp.einsum("knc,kc->nc", xg, pp["w_dw"])                         # (N, C)

    # BatchNorm1d training-mode batch stats (over the N real tokens), folded to scale/shift.
    mean = jnp.mean(conv, axis=0, keepdims=True)                            # (1, C)
    var = jnp.mean((conv - mean) ** 2, axis=0, keepdims=True)               # (1, C)
    bn_scale = pp["bn_w"] * lax.rsqrt(var + EPS)                            # (1, C)
    bn_shift = pp["bn_b"] - mean * bn_scale                                 # (1, C)

    conv_d = jnp.concatenate([conv, jnp.zeros((pad, C), jnp.float32)], axis=0)[perm]
    data_d = jnp.concatenate([data, jnp.zeros((pad, C), jnp.float32)], axis=0)[perm]
    bias = build_patch_bias(rel_pos, mask, pp["rpe_tab"])                   # (H, NPATCH, K, K)

    tok_spec = pl.BlockSpec((TM, C), lambda i: (i, 0))
    row_c = pl.BlockSpec((1, C), lambda i: (0, 0))

    flops = (2 * N_A * C * 3 * C + 4 * H * N_A * K * CH
             + 2 * N_A * C * C + 4 * N_A * C * HID + 12 * N_A * C)
    transcendentals = N_A * (H * K + HID + 2)
    bytes_accessed = (4 * 3 * N_A * C + 4 * H * NPATCH * K * K
                      + 2 * (3 * C * C + C * C + 2 * C * HID)
                      + 4 * (10 * C + 3 * C + HID))

    out_dil = pl.pallas_call(
        octformer_block_kernel,
        out_shape=jax.ShapeDtypeStruct((N_A, C), jnp.float32),
        grid=(NPATCH // PPT,),
        in_specs=[
            tok_spec,                                           # conv (token tile)
            tok_spec,                                           # data (token tile)
            row_c, row_c,                                       # bn scale / shift
            row_c, row_c,                                       # ln1 w / b
            pl.BlockSpec((C, 3 * C), lambda i: (0, 0)),         # qkv weight (bf16)
            pl.BlockSpec((1, 3 * C), lambda i: (0, 0)),         # qkv bias
            pl.BlockSpec((H, PPT, K, K), lambda i: (0, i, 0, 0)),  # per-patch attn bias
            pl.BlockSpec((C, C), lambda i: (0, 0)),             # proj weight (bf16)
            row_c,                                              # proj bias
            row_c, row_c,                                       # ln2 w / b
            pl.BlockSpec((C, HID), lambda i: (0, 0)),           # fc1 weight (bf16)
            pl.BlockSpec((1, HID), lambda i: (0, 0)),           # fc1 bias
            pl.BlockSpec((HID, C), lambda i: (0, 0)),           # fc2 weight (bf16)
            row_c,                                              # fc2 bias
        ],
        out_specs=tok_spec,
        compiler_params=pltpu.CompilerParams(
            dimension_semantics=("parallel",),
            vmem_limit_bytes=32 * 1024 * 1024),
        cost_estimate=pl.CostEstimate(flops=flops,
                                      transcendentals=transcendentals,
                                      bytes_accessed=bytes_accessed),
    )(conv_d, data_d, bn_scale, bn_shift, pp["ln1_w"], pp["ln1_b"],
      pp["wqkv_t"], pp["bqkv"], bias, pp["wproj_t"], pp["bproj"],
      pp["ln2_w"], pp["ln2_b"], pp["w1_t"], pp["b1"], pp["w2_t"], pp["b2"])

    # undo dilation ordering (patch_reverse) and crop the padding
    return out_dil[inv_perm][:N]


def octformer_block_reference(p, data, nbr, mask, rel_pos):
    # pure-JAX f32 reference of the same forward (for a sanity check)
    xg = gather_neighbors(data, nbr)                                        # (KTAPS, N, C)
    conv = jnp.einsum("knc,kc->nc", xg, p["w_dw"])
    mean = conv.mean(axis=0)
    var = ((conv - mean) ** 2).mean(axis=0)
    bn = (conv - mean) * lax.rsqrt(var + EPS) * p["bn_w"] + p["bn_b"]
    data1 = bn + data
    xn1 = _layernorm(data1, p["ln1_w"], p["ln1_b"])

    xpad = jnp.concatenate([xn1, jnp.zeros((N_A - N, C), jnp.float32)], axis=0)
    xdil = xpad.reshape(-1, K, DIL, C).transpose(0, 2, 1, 3).reshape(NPATCH, K, C)
    qkv = xdil @ p["wqkv"].T + p["bqkv"]
    qkv = qkv.reshape(NPATCH, K, 3, H, CH).transpose(2, 0, 3, 1, 4)
    q, k, v = qkv[0] * SCALE, qkv[1], qkv[2]
    attn = jnp.einsum("bhkc,bhmc->bhkm", q, k)
    attn = attn + rpe_bias(rel_pos, p["rpe_tab"]) + mask[:, None, :, :]
    attn = jax.nn.softmax(attn, axis=-1)
    o = jnp.einsum("bhkm,bhmc->bhkc", attn, v).transpose(0, 2, 1, 3).reshape(N_A, C)
    o = o.reshape(-1, DIL, K, C).transpose(0, 2, 1, 3).reshape(N_A, C)[:N]
    attn_out = o @ p["wproj"].T + p["bproj"]

    data2 = data1 + attn_out
    xn2 = _layernorm(data2, p["ln2_w"], p["ln2_b"])
    ffn = _gelu(xn2 @ p["w1"].T + p["b1"]) @ p["w2"].T + p["b2"]
    return data2 + ffn


# ---------------------------------------- main ------------------------------------------
if __name__ == "__main__":
    key = jax.random.PRNGKey(0)
    ks = jax.random.split(key, 16)
    params = {
        "w_dw":   0.10 * jax.random.normal(ks[0], (KTAPS, C), jnp.float32),
        "bn_w":   1.0 + 0.1 * jax.random.normal(ks[1], (C,), jnp.float32),
        "bn_b":   0.10 * jax.random.normal(ks[2], (C,), jnp.float32),
        "ln1_w":  1.0 + 0.1 * jax.random.normal(ks[3], (C,), jnp.float32),
        "ln1_b":  0.10 * jax.random.normal(ks[4], (C,), jnp.float32),
        "wqkv":   0.05 * jax.random.normal(ks[5], (3 * C, C), jnp.float32),   # torch (out, in)
        "bqkv":   0.05 * jax.random.normal(ks[6], (3 * C,), jnp.float32),
        "wproj":  0.05 * jax.random.normal(ks[7], (C, C), jnp.float32),
        "bproj":  0.05 * jax.random.normal(ks[8], (C,), jnp.float32),
        "rpe_tab": 0.02 * jax.random.normal(ks[9], (3 * RPE_NUM, H), jnp.float32),
        "ln2_w":  1.0 + 0.1 * jax.random.normal(ks[10], (C,), jnp.float32),
        "ln2_b":  0.10 * jax.random.normal(ks[11], (C,), jnp.float32),
        "w1":     0.05 * jax.random.normal(ks[12], (HID, C), jnp.float32),
        "b1":     0.05 * jax.random.normal(ks[13], (HID,), jnp.float32),
        "w2":     0.05 * jax.random.normal(ks[14], (C, HID), jnp.float32),
        "b2":     0.05 * jax.random.normal(ks[15], (C,), jnp.float32),
    }
    pp = prepare_params(params)   # one-time: transposes / reshapes / scale folding / bf16 cast

    # synthetic octree structure (deterministic)
    kd = jax.random.split(jax.random.PRNGKey(1), 3)
    xyz = jax.random.randint(kd[0], (N, 3), 0, 2 ** DEPTH, dtype=jnp.int32)
    nbr = jax.random.randint(kd[1], (N, KTAPS), 0, N, dtype=jnp.int32)
    drop = jax.random.uniform(kd[2], (N, KTAPS)) < 0.2
    nbr = jnp.where(drop, -1, nbr)                                   # -1 = missing neighbor
    nbr = nbr.at[:, KTAPS // 2].set(jnp.arange(N, dtype=jnp.int32))  # center tap = self
    batch_id = jnp.concatenate([jnp.zeros((35,), jnp.int32),
                                jnp.ones((N - 35,), jnp.int32)])     # sorted octree batch ids
    mask, rel_pos = build_octree_aux(batch_id, xyz)

    data = jax.random.normal(jax.random.PRNGKey(2), (N, C), jnp.float32)

    out = octformer_block_pallas(pp, data, nbr, mask, rel_pos)
    out = jax.block_until_ready(out)

    ref = jax.block_until_ready(octformer_block_reference(params, data, nbr, mask, rel_pos))
    np.testing.assert_allclose(np.asarray(out), np.asarray(ref), rtol=2e-2, atol=2e-2)

    # TODO(synk): octree neighbor tables / key2xyz come from ocnn; here they are synthetic.
    print("KERNEL_OK")
</pallas_src>

<mosaic_0001>
module attributes {stable_mosaic.version = 11 : i64} {
  func.func @octformer_block_kernel(%arg0: i32, %arg1: memref<32x32xf32, #tpu.memory_space<vmem>>, %arg2: memref<32x32xf32, #tpu.memory_space<vmem>>, %arg3: memref<1x32xf32, #tpu.memory_space<vmem>>, %arg4: memref<1x32xf32, #tpu.memory_space<vmem>>, %arg5: memref<1x32xf32, #tpu.memory_space<vmem>>, %arg6: memref<1x32xf32, #tpu.memory_space<vmem>>, %arg7: memref<32x96xbf16, #tpu.memory_space<vmem>>, %arg8: memref<1x96xf32, #tpu.memory_space<vmem>>, %arg9: memref<2x4x8x8xf32, #tpu.memory_space<vmem>>, %arg10: memref<32x32xbf16, #tpu.memory_space<vmem>>, %arg11: memref<1x32xf32, #tpu.memory_space<vmem>>, %arg12: memref<1x32xf32, #tpu.memory_space<vmem>>, %arg13: memref<1x32xf32, #tpu.memory_space<vmem>>, %arg14: memref<32x128xbf16, #tpu.memory_space<vmem>>, %arg15: memref<1x128xf32, #tpu.memory_space<vmem>>, %arg16: memref<128x32xbf16, #tpu.memory_space<vmem>>, %arg17: memref<1x32xf32, #tpu.memory_space<vmem>>, %arg18: memref<32x32xf32, #tpu.memory_space<vmem>>) attributes {dimension_semantics = [#tpu.dimension_semantics<parallel>], iteration_bounds = array<i64: 2>, scalar_prefetch = 0 : i64, scratch_operands = 0 : i64, tpu.core_type = #tpu.core_type<tc>, window_params = [{transform_indices = @transform_0, window_bounds = array<i64: 32, 32>}, {transform_indices = @transform_1, window_bounds = array<i64: 32, 32>}, {pipeline_mode = #tpu.pipeline_mode<synchronous>, transform_indices = @transform_2, window_bounds = array<i64: 1, 32>}, {pipeline_mode = #tpu.pipeline_mode<synchronous>, transform_indices = @transform_3, window_bounds = array<i64: 1, 32>}, {pipeline_mode = #tpu.pipeline_mode<synchronous>, transform_indices = @transform_4, window_bounds = array<i64: 1, 32>}, {pipeline_mode = #tpu.pipeline_mode<synchronous>, transform_indices = @transform_5, window_bounds = array<i64: 1, 32>}, {pipeline_mode = #tpu.pipeline_mode<synchronous>, transform_indices = @transform_6, window_bounds = array<i64: 32, 96>}, {pipeline_mode = #tpu.pipeline_mode<synchronous>, transform_indices = @transform_7, window_bounds = array<i64: 1, 96>}, {transform_indices = @transform_8, window_bounds = array<i64: 2, 4, 8, 8>}, {pipeline_mode = #tpu.pipeline_mode<synchronous>, transform_indices = @transform_9, window_bounds = array<i64: 32, 32>}, {pipeline_mode = #tpu.pipeline_mode<synchronous>, transform_indices = @transform_10, window_bounds = array<i64: 1, 32>}, {pipeline_mode = #tpu.pipeline_mode<synchronous>, transform_indices = @transform_11, window_bounds = array<i64: 1, 32>}, {pipeline_mode = #tpu.pipeline_mode<synchronous>, transform_indices = @transform_12, window_bounds = array<i64: 1, 32>}, {pipeline_mode = #tpu.pipeline_mode<synchronous>, transform_indices = @transform_13, window_bounds = array<i64: 32, 128>}, {pipeline_mode = #tpu.pipeline_mode<synchronous>, transform_indices = @transform_14, window_bounds = array<i64: 1, 128>}, {pipeline_mode = #tpu.pipeline_mode<synchronous>, transform_indices = @transform_15, window_bounds = array<i64: 128, 32>}, {pipeline_mode = #tpu.pipeline_mode<synchronous>, transform_indices = @transform_16, window_bounds = array<i64: 1, 32>}, {transform_indices = @transform_17, window_bounds = array<i64: 32, 32>}]} {
    %c0 = arith.constant 0 : index
    %c0_0 = arith.constant 0 : index
    %0 = vector.load %arg1[%c0, %c0_0] : memref<32x32xf32, #tpu.memory_space<vmem>>, vector<32x32xf32>
    %c0_1 = arith.constant 0 : index
    %c0_2 = arith.constant 0 : index
    %1 = vector.load %arg3[%c0_1, %c0_2] : memref<1x32xf32, #tpu.memory_space<vmem>>, vector<1x32xf32>
    %2 = vector.broadcast %1 : vector<1x32xf32> to vector<32x32xf32>
    %3 = arith.mulf %0, %2 : vector<32x32xf32>
    %c0_3 = arith.constant 0 : index
    %c0_4 = arith.constant 0 : index
    %4 = vector.load %arg4[%c0_3, %c0_4] : memref<1x32xf32, #tpu.memory_space<vmem>>, vector<1x32xf32>
    %5 = vector.broadcast %4 : vector<1x32xf32> to vector<32x32xf32>
    %6 = arith.addf %3, %5 : vector<32x32xf32>
    %c0_5 = arith.constant 0 : index
    %c0_6 = arith.constant 0 : index
    %7 = vector.load %arg2[%c0_5, %c0_6] : memref<32x32xf32, #tpu.memory_space<vmem>>, vector<32x32xf32>
    %8 = arith.addf %6, %7 : vector<32x32xf32>
    %c0_7 = arith.constant 0 : index
    %c0_8 = arith.constant 0 : index
    %9 = vector.load %arg5[%c0_7, %c0_8] : memref<1x32xf32, #tpu.memory_space<vmem>>, vector<1x32xf32>
    %c0_9 = arith.constant 0 : index
    %c0_10 = arith.constant 0 : index
    %10 = vector.load %arg6[%c0_9, %c0_10] : memref<1x32xf32, #tpu.memory_space<vmem>>, vector<1x32xf32>
    %cst = arith.constant dense<0.000000e+00> : vector<32xf32>
    %11 = vector.multi_reduction <add>, %8, %cst [1] : vector<32x32xf32> to vector<32xf32>
    %12 = vector.shape_cast %11 : vector<32xf32> to vector<32x1xf32>
    %cst_11 = arith.constant 3.200000e+01 : f32
    %13 = vector.broadcast %cst_11 : f32 to vector<32x1xf32>
    %14 = arith.divf %12, %13 : vector<32x1xf32>
    %15 = vector.broadcast %14 : vector<32x1xf32> to vector<32x32xf32>
    %16 = arith.subf %8, %15 : vector<32x32xf32>
    %17 = arith.mulf %16, %16 : vector<32x32xf32>
    %cst_12 = arith.constant dense<0.000000e+00> : vector<32xf32>
    %18 = vector.multi_reduction <add>, %17, %cst_12 [1] : vector<32x32xf32> to vector<32xf32>
    %19 = vector.shape_cast %18 : vector<32xf32> to vector<32x1xf32>
    %cst_13 = arith.constant 3.200000e+01 : f32
    %20 = vector.broadcast %cst_13 : f32 to vector<32x1xf32>
    %21 = arith.divf %19, %20 : vector<32x1xf32>
    %22 = vector.broadcast %14 : vector<32x1xf32> to vector<32x32xf32>
    %23 = arith.subf %8, %22 : vector<32x32xf32>
    %cst_14 = arith.constant 9.99999974E-6 : f32
    %24 = vector.broadcast %cst_14 : f32 to vector<32x1xf32>
    %25 = arith.addf %21, %24 : vector<32x1xf32>
    %26 = math.rsqrt %25 : vector<32x1xf32>
    %27 = vector.broadcast %26 : vector<32x1xf32> to vector<32x32xf32>
    %28 = arith.mulf %23, %27 : vector<32x32xf32>
    %29 = vector.broadcast %9 : vector<1x32xf32> to vector<32x32xf32>
    %30 = arith.mulf %28, %29 : vector<32x32xf32>
    %31 = vector.broadcast %10 : vector<1x32xf32> to vector<32x32xf32>
    %32 = arith.addf %30, %31 : vector<32x32xf32>
    %33 = arith.truncf %32 : vector<32x32xf32> to vector<32x32xbf16>
    %c0_15 = arith.constant 0 : index
    %c0_16 = arith.constant 0 : index
    %34 = vector.load %arg7[%c0_15, %c0_16] : memref<32x96xbf16, #tpu.memory_space<vmem>>, vector<32x96xbf16>
    %cst_17 = arith.constant dense<0.000000e+00> : vector<32x96xf32>
    %35 = tpu.matmul %33, %34, %cst_17 {dimension_numbers = #tpu.dot_dimension_numbers<[1], [0], [0], [1], [0, 0, 1, 1], [], []>} : vector<32x32xbf16>, vector<32x96xbf16>, vector<32x96xf32> -> vector<32x96xf32>
    %c0_18 = arith.constant 0 : index
    %c0_19 = arith.constant 0 : index
    %36 = vector.load %arg8[%c0_18, %c0_19] : memref<1x96xf32, #tpu.memory_space<vmem>>, vector<1x96xf32>
    %37 = vector.broadcast %36 : vector<1x96xf32> to vector<32x96xf32>
    %38 = arith.addf %35, %37 : vector<32x96xf32>
    %c0_20 = arith.constant 0 : index
    %c0_21 = arith.constant 0 : index
    %c0_22 = arith.constant 0 : index
    %c0_23 = arith.constant 0 : index
    %39 = vector.load %arg9[%c0_20, %c0_21, %c0_22, %c0_23] : memref<2x4x8x8xf32, #tpu.memory_space<vmem>>, vector<2x4x8x8xf32>
    %40 = vector.extract_strided_slice %38 {offsets = [0, 0], sizes = [32, 16], strides = [1, 1]} : vector<32x96xf32> to vector<32x16xf32>
    %41 = vector.shape_cast %40 : vector<32x16xf32> to vector<4x8x16xf32>
    %42 = vector.extract_strided_slice %38 {offsets = [0, 32], sizes = [32, 16], strides = [1, 1]} : vector<32x96xf32> to vector<32x16xf32>
    %43 = vector.shape_cast %42 : vector<32x16xf32> to vector<4x8x16xf32>
    %44 = vector.extract_strided_slice %38 {offsets = [0, 64], sizes = [32, 16], strides = [1, 1]} : vector<32x96xf32> to vector<32x16xf32>
    %45 = vector.shape_cast %44 : vector<32x16xf32> to vector<4x8x16xf32>
    %46 = arith.truncf %41 : vector<4x8x16xf32> to vector<4x8x16xbf16>
    %47 = arith.truncf %43 : vector<4x8x16xf32> to vector<4x8x16xbf16>
    %cst_24 = arith.constant dense<0.000000e+00> : vector<4x8x8xf32>
    %48 = tpu.matmul %46, %47, %cst_24 {dimension_numbers = #tpu.dot_dimension_numbers<[2], [2], [1], [1], [0, 0, 0, 1, 1, 1], [0], [0]>} : vector<4x8x16xbf16>, vector<4x8x16xbf16>, vector<4x8x8xf32> -> vector<4x8x8xf32>
    %49 = vector.extract_strided_slice %39 {offsets = [0, 0, 0, 0], sizes = [1, 4, 8, 8], strides = [1, 1, 1, 1]} : vector<2x4x8x8xf32> to vector<1x4x8x8xf32>
    %50 = vector.shape_cast %49 : vector<1x4x8x8xf32> to vector<4x8x8xf32>
    %51 = arith.addf %48, %50 : vector<4x8x8xf32>
    %cst_25 = arith.constant dense<0xFF800000> : vector<4x8xf32>
    %52 = vector.multi_reduction <maximumf>, %51, %cst_25 [2] : vector<4x8x8xf32> to vector<4x8xf32>
    %53 = vector.shape_cast %52 : vector<4x8xf32> to vector<4x8x1xf32>
    %54 = vector.broadcast %53 : vector<4x8x1xf32> to vector<4x8x8xf32>
    %55 = arith.subf %51, %54 : vector<4x8x8xf32>
    %56 = math.exp %55 : vector<4x8x8xf32>
    %cst_26 = arith.constant dense<0.000000e+00> : vector<4x8xf32>
    %57 = vector.multi_reduction <add>, %56, %cst_26 [2] : vector<4x8x8xf32> to vector<4x8xf32>
    %58 = vector.shape_cast %57 : vector<4x8xf32> to vector<4x8x1xf32>
    %59 = tpu.reciprocal %58 {approx = true} : vector<4x8x1xf32> -> vector<4x8x1xf32>
    %60 = vector.broadcast %59 : vector<4x8x1xf32> to vector<4x8x8xf32>
    %61 = arith.mulf %56, %60 : vector<4x8x8xf32>
    %62 = arith.truncf %61 : vector<4x8x8xf32> to vector<4x8x8xbf16>
    %63 = arith.truncf %45 : vector<4x8x16xf32> to vector<4x8x16xbf16>
    %cst_27 = arith.constant dense<0.000000e+00> : vector<4x8x16xf32>
    %64 = tpu.matmul %62, %63, %cst_27 {dimension_numbers = #tpu.dot_dimension_numbers<[2], [1], [1], [2], [0, 0, 0, 1, 1, 2], [0], [0]>} : vector<4x8x8xbf16>, vector<4x8x16xbf16>, vector<4x8x16xf32> -> vector<4x8x16xf32>
    %65 = vector.shape_cast %64 : vector<4x8x16xf32> to vector<32x16xf32>
    %66 = vector.extract_strided_slice %38 {offsets = [0, 16], sizes = [32, 16], strides = [1, 1]} : vector<32x96xf32> to vector<32x16xf32>
    %67 = vector.shape_cast %66 : vector<32x16xf32> to vector<4x8x16xf32>
    %68 = vector.extract_strided_slice %38 {offsets = [0, 48], sizes = [32, 16], strides = [1, 1]} : vector<32x96xf32> to vector<32x16xf32>
    %69 = vector.shape_cast %68 : vector<32x16xf32> to vector<4x8x16xf32>
    %70 = vector.extract_strided_slice %38 {offsets = [0, 80], sizes = [32, 16], strides = [1, 1]} : vector<32x96xf32> to vector<32x16xf32>
    %71 = vector.shape_cast %70 : vector<32x16xf32> to vector<4x8x16xf32>
    %72 = arith.truncf %67 : vector<4x8x16xf32> to vector<4x8x16xbf16>
    %73 = arith.truncf %69 : vector<4x8x16xf32> to vector<4x8x16xbf16>
    %cst_28 = arith.constant dense<0.000000e+00> : vector<4x8x8xf32>
    %74 = tpu.matmul %72, %73, %cst_28 {dimension_numbers = #tpu.dot_dimension_numbers<[2], [2], [1], [1], [0, 0, 0, 1, 1, 1], [0], [0]>} : vector<4x8x16xbf16>, vector<4x8x16xbf16>, vector<4x8x8xf32> -> vector<4x8x8xf32>
    %75 = vector.extract_strided_slice %39 {offsets = [1, 0, 0, 0], sizes = [1, 4, 8, 8], strides = [1, 1, 1, 1]} : vector<2x4x8x8xf32> to vector<1x4x8x8xf32>
    %76 = vector.shape_cast %75 : vector<1x4x8x8xf32> to vector<4x8x8xf32>
    %77 = arith.addf %74, %76 : vector<4x8x8xf32>
    %cst_29 = arith.constant dense<0xFF800000> : vector<4x8xf32>
    %78 = vector.multi_reduction <maximumf>, %77, %cst_29 [2] : vector<4x8x8xf32> to vector<4x8xf32>
    %79 = vector.shape_cast %78 : vector<4x8xf32> to vector<4x8x1xf32>
    %80 = vector.broadcast %79 : vector<4x8x1xf32> to vector<4x8x8xf32>
    %81 = arith.subf %77, %80 : vector<4x8x8xf32>
    %82 = math.exp %81 : vector<4x8x8xf32>
    %cst_30 = arith.constant dense<0.000000e+00> : vector<4x8xf32>
    %83 = vector.multi_reduction <add>, %82, %cst_30 [2] : vector<4x8x8xf32> to vector<4x8xf32>
    %84 = vector.shape_cast %83 : vector<4x8xf32> to vector<4x8x1xf32>
    %85 = tpu.reciprocal %84 {approx = true} : vector<4x8x1xf32> -> vector<4x8x1xf32>
    %86 = vector.broadcast %85 : vector<4x8x1xf32> to vector<4x8x8xf32>
    %87 = arith.mulf %82, %86 : vector<4x8x8xf32>
    %88 = arith.truncf %87 : vector<4x8x8xf32> to vector<4x8x8xbf16>
    %89 = arith.truncf %71 : vector<4x8x16xf32> to vector<4x8x16xbf16>
    %cst_31 = arith.constant dense<0.000000e+00> : vector<4x8x16xf32>
    %90 = tpu.matmul %88, %89, %cst_31 {dimension_numbers = #tpu.dot_dimension_numbers<[2], [1], [1], [2], [0, 0, 0, 1, 1, 2], [0], [0]>} : vector<4x8x8xbf16>, vector<4x8x16xbf16>, vector<4x8x16xf32> -> vector<4x8x16xf32>
    %91 = vector.shape_cast %90 : vector<4x8x16xf32> to vector<32x16xf32>
    %92 = tpu.concatenate %65, %91 in 1 : vector<32x16xf32>, vector<32x16xf32> -> vector<32x32xf32>
    %93 = arith.truncf %92 : vector<32x32xf32> to vector<32x32xbf16>
    %c0_32 = arith.constant 0 : index
    %c0_33 = arith.constant 0 : index
    %94 = vector.load %arg10[%c0_32, %c0_33] : memref<32x32xbf16, #tpu.memory_space<vmem>>, vector<32x32xbf16>
    %cst_34 = arith.constant dense<0.000000e+00> : vector<32x32xf32>
    %95 = tpu.matmul %93, %94, %cst_34 {dimension_numbers = #tpu.dot_dimension_numbers<[1], [0], [0], [1], [0, 0, 1, 1], [], []>} : vector<32x32xbf16>, vector<32x32xbf16>, vector<32x32xf32> -> vector<32x32xf32>
    %c0_35 = arith.constant 0 : index
    %c0_36 = arith.constant 0 : index
    %96 = vector.load %arg11[%c0_35, %c0_36] : memref<1x32xf32, #tpu.memory_space<vmem>>, vector<1x32xf32>
    %97 = vector.broadcast %96 : vector<1x32xf32> to vector<32x32xf32>
    %98 = arith.addf %95, %97 : vector<32x32xf32>
    %99 = arith.addf %8, %98 : vector<32x32xf32>
    %c0_37 = arith.constant 0 : index
    %c0_38 = arith.constant 0 : index
    %100 = vector.load %arg12[%c0_37, %c0_38] : memref<1x32xf32, #tpu.memory_space<vmem>>, vector<1x32xf32>
    %c0_39 = arith.constant 0 : index
    %c0_40 = arith.constant 0 : index
    %101 = vector.load %arg13[%c0_39, %c0_40] : memref<1x32xf32, #tpu.memory_space<vmem>>, vector<1x32xf32>
    %cst_41 = arith.constant dense<0.000000e+00> : vector<32xf32>
    %102 = vector.multi_reduction <add>, %99, %cst_41 [1] : vector<32x32xf32> to vector<32xf32>
    %103 = vector.shape_cast %102 : vector<32xf32> to vector<32x1xf32>
    %cst_42 = arith.constant 3.200000e+01 : f32
    %104 = vector.broadcast %cst_42 : f32 to vector<32x1xf32>
    %105 = arith.divf %103, %104 : vector<32x1xf32>
    %106 = vector.broadcast %105 : vector<32x1xf32> to vector<32x32xf32>
    %107 = arith.subf %99, %106 : vector<32x32xf32>
    %108 = arith.mulf %107, %107 : vector<32x32xf32>
    %cst_43 = arith.constant dense<0.000000e+00> : vector<32xf32>
    %109 = vector.multi_reduction <add>, %108, %cst_43 [1] : vector<32x32xf32> to vector<32xf32>
    %110 = vector.shape_cast %109 : vector<32xf32> to vector<32x1xf32>
    %cst_44 = arith.constant 3.200000e+01 : f32
    %111 = vector.broadcast %cst_44 : f32 to vector<32x1xf32>
    %112 = arith.divf %110, %111 : vector<32x1xf32>
    %113 = vector.broadcast %105 : vector<32x1xf32> to vector<32x32xf32>
    %114 = arith.subf %99, %113 : vector<32x32xf32>
    %cst_45 = arith.constant 9.99999974E-6 : f32
    %115 = vector.broadcast %cst_45 : f32 to vector<32x1xf32>
    %116 = arith.addf %112, %115 : vector<32x1xf32>
    %117 = math.rsqrt %116 : vector<32x1xf32>
    %118 = vector.broadcast %117 : vector<32x1xf32> to vector<32x32xf32>
    %119 = arith.mulf %114, %118 : vector<32x32xf32>
    %120 = vector.broadcast %100 : vector<1x32xf32> to vector<32x32xf32>
    %121 = arith.mulf %119, %120 : vector<32x32xf32>
    %122 = vector.broadcast %101 : vector<1x32xf32> to vector<32x32xf32>
    %123 = arith.addf %121, %122 : vector<32x32xf32>
    %124 = arith.truncf %123 : vector<32x32xf32> to vector<32x32xbf16>
    %c0_46 = arith.constant 0 : index
    %c0_47 = arith.constant 0 : index
    %125 = vector.load %arg14[%c0_46, %c0_47] : memref<32x128xbf16, #tpu.memory_space<vmem>>, vector<32x128xbf16>
    %cst_48 = arith.constant dense<0.000000e+00> : vector<32x128xf32>
    %126 = tpu.matmul %124, %125, %cst_48 {dimension_numbers = #tpu.dot_dimension_numbers<[1], [0], [0], [1], [0, 0, 1, 1], [], []>} : vector<32x32xbf16>, vector<32x128xbf16>, vector<32x128xf32> -> vector<32x128xf32>
    %c0_49 = arith.constant 0 : index
    %c0_50 = arith.constant 0 : index
    %127 = vector.load %arg15[%c0_49, %c0_50] : memref<1x128xf32, #tpu.memory_space<vmem>>, vector<1x128xf32>
    %128 = vector.broadcast %127 : vector<1x128xf32> to vector<32x128xf32>
    %129 = arith.addf %126, %128 : vector<32x128xf32>
    %cst_51 = arith.constant 5.000000e-01 : f32
    %130 = vector.broadcast %cst_51 : f32 to vector<32x128xf32>
    %131 = arith.mulf %130, %129 : vector<32x128xf32>
    %cst_52 = arith.constant 0.707106769 : f32
    %132 = vector.broadcast %cst_52 : f32 to vector<32x128xf32>
    %133 = arith.mulf %129, %132 : vector<32x128xf32>
    %134 = math.erf %133 : vector<32x128xf32>
    %cst_53 = arith.constant 1.000000e+00 : f32
    %135 = vector.broadcast %cst_53 : f32 to vector<32x128xf32>
    %136 = arith.addf %135, %134 : vector<32x128xf32>
    %137 = arith.mulf %131, %136 : vector<32x128xf32>
    %138 = arith.truncf %137 : vector<32x128xf32> to vector<32x128xbf16>
    %c0_54 = arith.constant 0 : index
    %c0_55 = arith.constant 0 : index
    %139 = vector.load %arg16[%c0_54, %c0_55] : memref<128x32xbf16, #tpu.memory_space<vmem>>, vector<128x32xbf16>
    %cst_56 = arith.constant dense<0.000000e+00> : vector<32x32xf32>
    %140 = tpu.matmul %138, %139, %cst_56 {dimension_numbers = #tpu.dot_dimension_numbers<[1], [0], [0], [1], [0, 0, 1, 1], [], []>} : vector<32x128xbf16>, vector<128x32xbf16>, vector<32x32xf32> -> vector<32x32xf32>
    %c0_57 = arith.constant 0 : index
    %c0_58 = arith.constant 0 : index
    %141 = vector.load %arg17[%c0_57, %c0_58] : memref<1x32xf32, #tpu.memory_space<vmem>>, vector<1x32xf32>
    %142 = vector.broadcast %141 : vector<1x32xf32> to vector<32x32xf32>
    %143 = arith.addf %140, %142 : vector<32x32xf32>
    %144 = arith.addf %99, %143 : vector<32x32xf32>
    %c0_59 = arith.constant 0 : index
    %c0_60 = arith.constant 0 : index
    %145 = vector.load %arg18[%c0_59, %c0_60] : memref<32x32xf32, #tpu.memory_space<vmem>>, vector<32x32xf32>
    tpu.vector_store %arg18[%c0_59, %c0_60], %144 {strides = array<i32>} : memref<32x32xf32, #tpu.memory_space<vmem>>, vector<32x32xf32>,
    return
  }
  func.func @transform_0(%arg0: i32) -> (i32, i32) {
    %c0_i32 = arith.constant 0 : i32
    %c0_i32_0 = arith.constant 0 : i32
    return %arg0, %c0_i32 : i32, i32
  }
  func.func @transform_1(%arg0: i32) -> (i32, i32) {
    %c0_i32 = arith.constant 0 : i32
    %c0_i32_0 = arith.constant 0 : i32
    return %arg0, %c0_i32 : i32, i32
  }
  func.func @transform_2(%arg0: i32) -> (i32, i32) {
    %c0_i32 = arith.constant 0 : i32
    %c0_i32_0 = arith.constant 0 : i32
    %c0_i32_1 = arith.constant 0 : i32
    return %c0_i32, %c0_i32_0 : i32, i32
  }
  func.func @transform_3(%arg0: i32) -> (i32, i32) {
    %c0_i32 = arith.constant 0 : i32
    %c0_i32_0 = arith.constant 0 : i32
    %c0_i32_1 = arith.constant 0 : i32
    return %c0_i32, %c0_i32_0 : i32, i32
  }
  func.func @transform_4(%arg0: i32) -> (i32, i32) {
    %c0_i32 = arith.constant 0 : i32
    %c0_i32_0 = arith.constant 0 : i32
    %c0_i32_1 = arith.constant 0 : i32
    return %c0_i32, %c0_i32_0 : i32, i32
  }
  func.func @transform_5(%arg0: i32) -> (i32, i32) {
    %c0_i32 = arith.constant 0 : i32
    %c0_i32_0 = arith.constant 0 : i32
    %c0_i32_1 = arith.constant 0 : i32
    return %c0_i32, %c0_i32_0 : i32, i32
  }
  func.func @transform_6(%arg0: i32) -> (i32, i32) {
    %c0_i32 = arith.constant 0 : i32
    %c0_i32_0 = arith.constant 0 : i32
    %c0_i32_1 = arith.constant 0 : i32
    return %c0_i32, %c0_i32_0 : i32, i32
  }
  func.func @transform_7(%arg0: i32) -> (i32, i32) {
    %c0_i32 = arith.constant 0 : i32
    %c0_i32_0 = arith.constant 0 : i32
    %c0_i32_1 = arith.constant 0 : i32
    return %c0_i32, %c0_i32_0 : i32, i32
  }
  func.func @transform_8(%arg0: i32) -> (i32, i32, i32, i32) {
    %c0_i32 = arith.constant 0 : i32
    %c0_i32_0 = arith.constant 0 : i32
    %c0_i32_1 = arith.constant 0 : i32
    %c0_i32_2 = arith.constant 0 : i32
    return %c0_i32, %arg0, %c0_i32_0, %c0_i32_1 : i32, i32, i32, i32
  }
  func.func @transform_9(%arg0: i32) -> (i32, i32) {
    %c0_i32 = arith.constant 0 : i32
    %c0_i32_0 = arith.constant 0 : i32
    %c0_i32_1 = arith.constant 0 : i32
    return %c0_i32, %c0_i32_0 : i32, i32
  }
  func.func @transform_10(%arg0: i32) -> (i32, i32) {
    %c0_i32 = arith.constant 0 : i32
    %c0_i32_0 = arith.constant 0 : i32
    %c0_i32_1 = arith.constant 0 : i32
    return %c0_i32, %c0_i32_0 : i32, i32
  }
  func.func @transform_11(%arg0: i32) -> (i32, i32) {
    %c0_i32 = arith.constant 0 : i32
    %c0_i32_0 = arith.constant 0 : i32
    %c0_i32_1 = arith.constant 0 : i32
    return %c0_i32, %c0_i32_0 : i32, i32
  }
  func.func @transform_12(%arg0: i32) -> (i32, i32) {
    %c0_i32 = arith.constant 0 : i32
    %c0_i32_0 = arith.constant 0 : i32
    %c0_i32_1 = arith.constant 0 : i32
    return %c0_i32, %c0_i32_0 : i32, i32
  }
  func.func @transform_13(%arg0: i32) -> (i32, i32) {
    %c0_i32 = arith.constant 0 : i32
    %c0_i32_0 = arith.constant 0 : i32
    %c0_i32_1 = arith.constant 0 : i32
    return %c0_i32, %c0_i32_0 : i32, i32
  }
  func.func @transform_14(%arg0: i32) -> (i32, i32) {
    %c0_i32 = arith.constant 0 : i32
    %c0_i32_0 = arith.constant 0 : i32
    %c0_i32_1 = arith.constant 0 : i32
    return %c0_i32, %c0_i32_0 : i32, i32
  }
  func.func @transform_15(%arg0: i32) -> (i32, i32) {
    %c0_i32 = arith.constant 0 : i32
    %c0_i32_0 = arith.constant 0 : i32
    %c0_i32_1 = arith.constant 0 : i32
    return %c0_i32, %c0_i32_0 : i32, i32
  }
  func.func @transform_16(%arg0: i32) -> (i32, i32) {
    %c0_i32 = arith.constant 0 : i32
    %c0_i32_0 = arith.constant 0 : i32
    %c0_i32_1 = arith.constant 0 : i32
    return %c0_i32, %c0_i32_0 : i32, i32
  }
  func.func @transform_17(%arg0: i32) -> (i32, i32) {
    %c0_i32 = arith.constant 0 : i32
    %c0_i32_0 = arith.constant 0 : i32
    return %arg0, %c0_i32 : i32, i32
  }
}

</mosaic_0001>

<bundles_post_ra>
// kernel: tpu_custom_call.1
= control target key start
LH: loop header
LB: loop body
LE: loop exit
PB: predicated region body
PF: predicated region fallthrough
CT: control target
= control target key end

     0   :  { %s3085_s0 = inlined_call_operand.vmem [shape: f32[64,32], index: 0, kind: input, shape index: {}]   ;;  %s3086_s1 = inlined_call_operand.vmem [shape: f32[64,32], index: 1, kind: input, shape index: {}]   ;;  %s3087_s2 = inlined_call_operand.vmem [shape: f32[1,32], index: 2, kind: input, shape index: {}]   ;;  %s3088_s3 = inlined_call_operand.vmem [shape: f32[1,32], index: 3, kind: input, shape index: {}]   ;;  %s3089_s4 = inlined_call_operand.vmem [shape: f32[1,32], index: 4, kind: input, shape index: {}]   ;;  %s3090_s5 = inlined_call_operand.vmem [shape: f32[1,32], index: 5, kind: input, shape index: {}]   ;;  %s3091_s6 = inlined_call_operand.vmem [shape: bf16[32,96], index: 6, kind: input, shape index: {}]   ;;  %s3092_s7 = inlined_call_operand.vmem [shape: f32[1,96], index: 7, kind: input, shape index: {}]   ;;  %s3093_s8 = inlined_call_operand.vmem [shape: f32[2,8,8,8], index: 8, kind: input, shape index: {}]   ;;  %s3094_s9 = inlined_call_operand.vmem [shape: bf16[32,32], index: 9, kind: input, shape index: {}]   ;;  %s3095_s10 = inlined_call_operand.vmem [shape: f32[1,32], index: 10, kind: input, shape index: {}]   ;;  %s3096_s11 = inlined_call_operand.vmem [shape: f32[1,32], index: 11, kind: input, shape index: {}]   ;;  %s3097_s12 = inlined_call_operand.vmem [shape: f32[1,32], index: 12, kind: input, shape index: {}]   ;;  %s3098_s13 = inlined_call_operand.vmem [shape: bf16[32,128], index: 13, kind: input, shape index: {}]   ;;  %s3099_s14 = inlined_call_operand.vmem [shape: f32[1,128], index: 14, kind: input, shape index: {}]   ;;  %s3100_s15 = inlined_call_operand.vmem [shape: bf16[128,32], index: 15, kind: input, shape index: {}]   ;;  %s3101_s16 = inlined_call_operand.vmem [shape: f32[1,32], index: 16, kind: input, shape index: {}]   ;;  %s3102_s17 = inlined_call_operand.vmem [shape: f32[64,32], index: 17, kind: output, shape index: {}]  }
   0x1   :  { %3104 = sst [smem:[#allocation5_spill]] %s3085_s0 }
   0x2   :  { %3105 = sst [smem:[#allocation6_spill]] %s3086_s1 }
   0x3   :  { %3106 = sst [smem:[#allocation7_spill]] %s3093_s8 }
   0x4   :  { %s2726_s24 = smov 0   ;;  %s2728_s25 = smov 0  }
   0x5   :  { %s2730_s26 = smov 0  }
   0x6 LB: > { %3107 = sst [smem:[#allocation3_spill]] %s2622_s25  ;;  %s2234_s27 = sadd.s32 4294967295, %s2626_s26   ;;  %s2626_s26 = sphi %s2730_s26, %s3114_s26   ;;  %s2622_s25 = sphi %s2728_s25, %s3113_s25   ;;  %s2618_s24 = sphi %s2726_s24, %s3112_s24  }
   0x7   : > { %s2743_s28 = sadd.s32 1, %s2626_s26   ;;  %s212_s0 = sadd.s32 1, %s2622_s25 }
   0x8   : > { %s209_s29 = ssub.s32 %s2626_s26, %s2743_s28  ;;  %p219_p1 = scmp.ne.s32.totalorder %s2622_s25, %s2618_s24 }
   0x9   : > { %p210_p0 = scmp.eq.s32.totalorder %s209_s29, 0  ;;  %p220_p2 = scmp.eq.s32.totalorder %s2626_s26, 0 }
   0xa   : > { %p2237_p4 = scmp.ge.s32.totalorder %s2626_s26, 2 }
   0xb   : > { %s2752_s30 = scalar_select %p210_p0, %s2622_s25, %s212_s0  }
   0xc   : > { %p221_p3 = por %p220_p2, %p219_p1  ;;  %481 = sbr.rel (%p2237_p4) target bundleno = 33 (0x21), region = 72 }
   0xd   : > { %3108 = sst [smem:[#allocation4_spill]] %s2752_s30 }
  0x13   : > { %502 = sbr.rel (!%p221_p3) target bundleno = 33 (0x21), region = 84  ;;  %s504_s18 = sand.u32 (%p221_p3), 1, %s2622_s25  }
  0x14   : > { %s2297_s19 = sshll.u32 (%p221_p3), %s2626_s26, 5  ;;  %s2238_s1 = sshll.u32 (%p221_p3), %s504_s18, 6 }
  0x15   : > { %s3109_s8 = sld [smem:[#allocation7_spill]] (%p221_p3)  ;;  %s506_s23 = scalar_lea.vmem (%p221_p3), [#allocation2], %s2238_s1 }
  0x1b   : > { %s509_s22 = scalar_lea.vmem %s3109_s8, %s2297_s19 }
  0x1c   : > { %v551_v0 = vld [vmem:[%s509_s22] sm:$0xff]  ;;  %v553_v1 = vld [vmem:[%s509_s22 + $0x8] sm:$0xff]  ;;  %v555_v2 = vld [vmem:[%s509_s22 + $0x10] sm:$0xff] }
  0x1d   : > { %552 = vst [vmem:[%s506_s23] sm:$0xff] %v551_v0  ;;  %554 = vst [vmem:[%s506_s23 + $0x8] sm:$0xff] %v553_v1  ;;  %v557_v3 = vld [vmem:[%s509_s22 + $0x18] sm:$0xff]  ;;  %v559_v4 = vld [vmem:[%s509_s22 + $0x40] sm:$0xff] }
  0x1e   : > { %556 = vst [vmem:[%s506_s23 + $0x10] sm:$0xff] %v555_v2  ;;  %v561_v5 = vld [vmem:[%s509_s22 + $0x48] sm:$0xff]  ;;  %558 = vst [vmem:[%s506_s23 + $0x18] sm:$0xff] %v557_v3  ;;  %v563_v6 = vld [vmem:[%s509_s22 + $0x50] sm:$0xff] }
  0x1f   : > { %560 = vst [vmem:[%s506_s23 + $0x20] sm:$0xff] %v559_v4  ;;  %562 = vst [vmem:[%s506_s23 + $0x28] sm:$0xff] %v561_v5  ;;  %v565_v7 = vld [vmem:[%s509_s22 + $0x58] sm:$0xff] }
  0x20   : > { %564 = vst [vmem:[%s506_s23 + $0x30] sm:$0xff] %v563_v6  ;;  %566 = vst [vmem:[%s506_s23 + $0x38] sm:$0xff] %v565_v7 }
  0x21 PF: > { %p2241_p5 = scmp.ge.s32.totalorder %s2626_s26, 1  ;;  %p571_p6 = scmp.lt.s32.totalorder %s2626_s26, 3 }
  0x23   : > { %p572_p7 = pnand %p2241_p5, %p571_p6 }
  0x24   : > { %s2243_s29 = sshll.u32 (!%p572_p7), %s2234_s27, 2  ;;  %v2249_v8 = vld [vmem:[%s3087_s2] ss:$0 sm:$0xff] (!%p572_p7)  ;;  %s3110_s23 = sld [smem:[#allocation5_spill]] (!%p572_p7)  ;;  %vm695_vm0 = vcmask (!%p572_p7), 261120   ;;  %v2535_v55 = vld [vmem:[%s3091_s6 + $0x8] sm:$0xff] (!%p572_p7)  }
  0x25   : > { %575 = sbr.rel (%p572_p7) target bundleno = 3234 (0xca2), region = 122  ;;  %p640_p8 = scmp.lt.s32.totalorder (!%p572_p7), %s2243_s29, 7  ;;  %v2250_v9 = vld [vmem:[%s3088_s3] ss:$0 sm:$0xff] (!%p572_p7)  ;;  %vm2629_vm1 = vmmov (!%p572_p7), 0   ;;  %vm864_vm2 = vcmask (!%p572_p7), 130048  }
  0x26   : > { %s3111_s30 = sld [smem:[#allocation6_spill]] (!%p572_p7)  ;;  %v2534_v54 = vld [vmem:[%s3091_s6] sm:$0xff] (!%p572_p7)   ;;  %s578_s26 = sand.u32 (!%p572_p7), 1, %s2618_s24   ;;  %vm1058_vm3 = vcmask (!%p572_p7), 64512   ;;  %vm1112_vm4 = vcmask (!%p572_p7), 1043456  }
  0x27   : > { %2352 = vmatprep.subr.bf16.mxu0 (!%p572_p7), %v2534_v54  ;;  %v2251_v6 = vld [vmem:[%s3089_s4] ss:$0 sm:$0xff] (!%p572_p7)  ;;  %s2242_s27 = sshll.u32 (!%p572_p7), %s578_s26, 6  ;;  %s2631_s24 = smov (!%p572_p7), 64  }
  0x28   : > { %2353 = vmatpush3.bf16.msra.mxu0 (!%p572_p7), %v2534_v54  ;;  %s2635_s1 = smov (!%p572_p7), 16  }
  0x29   : > { %2354 = vmatprep.subr.bf16.mxu0 (!%p572_p7), %v2535_v55 }
  0x2c   : > { %s3116_s29 = smov (!%p640_p8, %s2243_s29), 7  ;;  %2355 = vmatpush3.bf16.msra.mxu0 %v2535_v55 }
  0x2d   : > { %s2767_s19 = sshll.u32 %s3116_s29, 3  ;;  %s2634_s29 = smov 48  }
  0x2e   : > { %s643_s8 = scalar_lea.vmem %s3110_s23, %s2767_s19  ;;  %s649_s25 = scalar_lea.vmem %s3111_s30, %s2767_s19 }
  0x2f   : > { %v659_v10 = vld [vmem:[%s643_s8] sm:$0xff]  ;;  %v661_v12 = vld [vmem:[%s643_s8 + $0x10] sm:$0xff]  ;;  %v660_v16 = vld [vmem:[%s643_s8 + $0x8] sm:$0xff]  ;;  %s2630_s23 = smov 96   ;;  %s2633_s30 = smov 112  }
  0x30   : > { %v685_v11 = vld [vmem:[%s649_s25] sm:$0xff]  ;;  %v670_v13 = vmul.f32 %v2249_v8, %v659_v10  ;;  %v672_v14 = vmul.f32 %v2249_v8, %v661_v12  ;;  %v687_v15 = vld [vmem:[%s649_s25 + $0x10] sm:$0xff]  ;;  %v686_v17 = vld [vmem:[%s649_s25 + $0x8] sm:$0xff]  ;;  %v671_v18 = vmul.f32 %v2249_v8, %v660_v16 }
  0x31   : > { %v662_v19 = vld [vmem:[%s643_s8 + $0x18] sm:$0xff]  ;;  %v2252_v12 = vld [vmem:[%s3090_s5] ss:$0 sm:$0xff]  ;;  %s2864_s8 = scalar_lea.vmem [#allocation2], %s2242_s27 }
  0x32   : > { %v688_v20 = vld [vmem:[%s649_s25 + $0x18] sm:$0xff]  ;;  %v681_v21 = vadd.f32 %v2250_v9, %v670_v13  ;;  %v683_v22 = vadd.f32 %v2250_v9, %v672_v14  ;;  %v673_v23 = vmul.f32 %v2249_v8, %v662_v19  ;;  %v682_v24 = vadd.f32 %v2250_v9, %v671_v18  ;;  %s2632_s25 = smov 80  }
  0x34   : > { %v2780_v25 = vadd.f32 %v685_v11, %v681_v21  ;;  %v2782_v26 = vadd.f32 %v687_v15, %v683_v22  ;;  %v684_v27 = vadd.f32 %v2250_v9, %v673_v23  ;;  %v2784_v28 = vadd.f32 %v686_v17, %v682_v24 }
  0x35   : > { %v2628_v24 = vmov 0.0  }
  0x36   : > { %v696_v29 = vsel %vm695_vm0, %v2780_v25, 0.0  ;;  %v702_v30 = vsel %vm695_vm0, %v2782_v26, 0.0  ;;  %v2790_v31 = vadd.f32 %v688_v20, %v684_v27  ;;  %v699_v32 = vsel %vm695_vm0, %v2784_v28, 0.0  ;;  %2360 = vmatprep.subr.bf16.mxu0 %v2628_v24  ;;  %2372 = vmatprep.subr.bf16.mxu1 %v2628_v24  ;;  %v2253_v27 = vld [vmem:[%s3092_s7] ss:$0 sm:$0xff] }
  0x37   : > { %697 = vadd.xlane.f32.xlu0 %v696_v29  ;;  %703 = vadd.xlane.f32.xlu1 %v702_v30 }
  0x38   : > { %v705_v33 = vsel %vm695_vm0, %v2790_v31, 0.0  ;;  %2374 = vmatprep.mubr.msk.bf16.mxu1 %vm2629_vm1, %v2628_v24 }
  0x3b   : > { %700 = vadd.xlane.f32.xlu0 %v699_v32  ;;  %706 = vadd.xlane.f32.xlu1 %v705_v33 }
  0xc4   : > { %v698_v34 = vpop.xlane.xlu0 %697  ;;  %v704_v35 = vpop.xlane.xlu1 %703 }
  0xc5   : > { %v709_v36 = vmul.f32 0.03125, %v698_v34  ;;  %v711_v37 = vmul.f32 0.03125, %v704_v35 }
  0xc7   : > { %v713_v38 = vsub.f32 %v2780_v25, %v709_v36  ;;  %v715_v39 = vsub.f32 %v2782_v26, %v711_v37 }
  0xc8   : > { %v701_v40 = vpop.xlane.xlu0 %700  ;;  %v707_v41 = vpop.xlane.xlu1 %706 }
  0xc9   : > { %v710_v42 = vmul.f32 0.03125, %v701_v40  ;;  %v712_v43 = vmul.f32 0.03125, %v707_v41  ;;  %v717_v44 = vmul.f32 %v713_v38, %v713_v38  ;;  %v719_v45 = vmul.f32 %v715_v39, %v715_v39 }
  0xcb   : > { %v714_v46 = vsub.f32 %v2784_v28, %v710_v42  ;;  %v716_v47 = vsub.f32 %v2790_v31, %v712_v43  ;;  %v721_v48 = vsel %vm695_vm0, %v717_v44, 0.0  ;;  %v727_v49 = vsel %vm695_vm0, %v719_v45, 0.0 }
  0xcc   : > { %722 = vadd.xlane.f32.xlu0 %v721_v48 }
  0xcd   : > { %v718_v50 = vmul.f32 %v714_v46, %v714_v46  ;;  %v720_v51 = vmul.f32 %v716_v47, %v716_v47 }
  0xcf   : > { %v724_v52 = vsel %vm695_vm0, %v718_v50, 0.0  ;;  %v730_v53 = vsel %vm695_vm0, %v720_v51, 0.0  ;;  %v849_v50 = vld [vmem:[%s2864_s8] sm:$0xff] }
  0xd0   : > { %728 = vadd.xlane.f32.xlu0 %v727_v49  ;;  %725 = vadd.xlane.f32.xlu1 %v724_v52 }
  0xd4   : > { %731 = vadd.xlane.f32.xlu1 %v730_v53 }
 0x159   : > { %v723_v56 = vpop.xlane.xlu0 %722 }
 0x15a   : > { %v733_v57 = vmul.f32 0.03125, %v723_v56 }
 0x15c   : > { %v737_v58 = vadd.f32 1e-05, %v733_v57  ;;  %v851_v57 = vld [vmem:[%s2864_s8 + $0x10] sm:$0xff] }
 0x15d   : > { %v726_v59 = vpop.xlane.xlu1 %725  ;;  %v729_v60 = vpop.xlane.xlu0 %728 }
 0x15e   : > { %2548 = vrsqrt.f32 %v737_v58  ;;  %v734_v61 = vmul.f32 0.03125, %v726_v59  ;;  %v735_v62 = vmul.f32 0.03125, %v729_v60  ;;  %v850_v59 = vld [vmem:[%s2864_s8 + $0x8] sm:$0xff] }
 0x160   : > { %v738_v63 = vadd.f32 1e-05, %v734_v61  ;;  %v739_v0 = vadd.f32 1e-05, %v735_v62 }
 0x161   : > { %v732_v1 = vpop.xlane.xlu1 %731 }
 0x162   : > { %2550 = vrsqrt.f32 %v738_v63  ;;  %v736_v2 = vmul.f32 0.03125, %v732_v1 }
 0x163   : > { %2552 = vrsqrt.f32 %v739_v0 }
 0x164   : > { %v740_v3 = vadd.f32 1e-05, %v736_v2 }
 0x166   : > { %2554 = vrsqrt.f32 %v740_v3 }
 0x168   : > { %v2549_v4 = vpop.eup %2548 }
 0x169   : > { %v745_v5 = vmul.f32 %v2549_v4, %v713_v38 }
 0x16b   : > { %v755_v10 = vmul.f32 %v2251_v6, %v745_v5 }
 0x16c   : > { %v2551_v7 = vpop.eup %2550 }
 0x16d   : > { %v2553_v8 = vpop.eup %2552  ;;  %v746_v9 = vmul.f32 %v2551_v7, %v714_v46  ;;  %v765_v16 = vadd.f32 %v2252_v12, %v755_v10  ;;  %v852_v7 = vld [vmem:[%s2864_s8 + $0x18] sm:$0xff] }
 0x16e   : > { %v747_v11 = vmul.f32 %v2553_v8, %v715_v39 }
 0x16f   : > { %v756_v13 = vmul.f32 %v2251_v6, %v746_v9 }
 0x170   : > { %v2555_v14 = vpop.eup %2554  ;;  %v757_v18 = vmul.f32 %v2251_v6, %v747_v11 }
 0x171   : > { %v748_v15 = vmul.f32 %v2555_v14, %v716_v47  ;;  %v766_v17 = vadd.f32 %v2252_v12, %v756_v13 }
 0x172   : > { %v767_v21 = vadd.f32 %v2252_v12, %v757_v18 }
 0x173   : > { %v769_v19 = vpack.c.bf16 %v766_v17, %v765_v16  ;;  %v758_v20 = vmul.f32 %v2251_v6, %v748_v15 }
 0x175   : > { %2356 = vmatprep.mubr.msk.bf16.mxu0 %vm695_vm0, %v769_v19  ;;  %v768_v22 = vadd.f32 %v2252_v12, %v758_v20 }
 0x177   : > { %v770_v23 = vpack.c.bf16 %v768_v22, %v767_v21 }
 0x179   : > { %2357 = vmatmul.mubr.msk.bf16.vlgmr.msra.gmra.mrb[0].mxu0 %vm695_vm0, %v770_v23 }
 0x17a   : > { %2362 = vmatprep.mubr.msk.bf16.mxu0 %vm2629_vm1, %v2628_v24 }
 0x24c   : > { %v2358_v29 = vpop.f32.mrb[0].mxu0 }
 0x24d   : > { %v834_v30 = vpop.f32.mrb[1].mxu0  ;;  %v843_v37 = vadd.f32 %v2358_v29, %v2253_v27 }
 0x24e   : > { %v835_v32 = vadd.f32 %v2253_v27, %v834_v30  ;;  %v2359_v33 = vpop.f32.mrb[2].mxu0 }
 0x24f   : > { %v837_v34 = vpop.f32.mrb[3].mxu0  ;;  %v2833_v39 = vpack.c.bf16 %v843_v37, %v843_v37  ;;  %v846_v40 = vadd.f32 %v2359_v33, %v2253_v27 }
 0x250   : > { %v2827_v35 = vpack.c.bf16 %v835_v32, %v835_v32  ;;  %v838_v36 = vadd.f32 %v2253_v27, %v837_v34 }
 0x251   : > { %v2836_v41 = vpack.c.bf16 %v846_v40, %v846_v40 }
 0x252   : > { %v2829_v38 = vpack.c.bf16 %v838_v36, %v838_v36  ;;  %862 = vrot.lane.b32.xlu0 %v2827_v35, %s2630_s23 }
 0x254   : > { %912 = vrot.lane.b32.xlu1 %v2829_v38, %s2630_s23 }
 0x258   : > { %961 = vrot.lane.b32.xlu1 %v2833_v39, %s2630_s23 }
 0x25c   : > { %1010 = vrot.lane.b32.xlu1 %v2836_v41, %s2630_s23 }
 0x2c4   : > { %v863_v42 = vpop.permute.xlu0 %862 }
 0x2c5   : > { %v869_v43 = vsel %vm864_vm2, %v863_v42, 0 }
 0x2c6   : > { %v913_v44 = vpop.permute.xlu1 %912  ;;  %2361 = vmatpush3.bf16.xpose.msra.mxu0 %v869_v43 }
 0x2c7   : > { %2366 = vmatprep.subr.bf16.mxu0 %v2628_v24  ;;  %v918_v47 = vsel %vm864_vm2, %v913_v44, 0 }
 0x2ca   : > { %v962_v45 = vpop.permute.xlu1 %961 }
 0x2cb   : > { %v967_v46 = vsel %vm864_vm2, %v962_v45, 0 }
 0x2cc   : > { %2373 = vmatpush3.bf16.xpose.msra.mxu1 %v967_v46 }
 0x2cd   : > { %2363 = vmatmul.mubr.msk.bf16.vlgmr.msra.gmra.mrb[4].mxu0 %vm864_vm2, %v2827_v35  ;;  %2384 = vmatprep.subr.bf16.mxu1 %v2628_v24 }
 0x2ce   : > { %2367 = vmatpush3.bf16.xpose.msra.mxu0 %v918_v47  ;;  %2368 = vmatprep.mubr.msk.bf16.mxu0 %vm2629_vm1, %v2628_v24  ;;  %v1011_v48 = vpop.permute.xlu1 %1010 }
 0x2cf   : > { %2378 = vmatprep.subr.bf16.mxu0 %v2628_v24  ;;  %v1016_v49 = vsel %vm864_vm2, %v1011_v48, 0 }
 0x2d3   : > { %2375 = vmatmul.mubr.msk.bf16.vlgmr.msra.gmra.mrb[0].mxu1 %vm864_vm2, %v2833_v39 }
 0x2d4   : > { %2386 = vmatprep.mubr.msk.bf16.mxu1 %vm2629_vm1, %v2628_v24 }
 0x2d5   : > { %2369 = vmatmul.mubr.msk.bf16.vlgmr.msra.gmra.mrb[8].mxu0 %vm864_vm2, %v2829_v38 }
 0x2d6   : > { %2379 = vmatpush3.bf16.xpose.msra.mxu0 %v1016_v49  ;;  %2380 = vmatprep.mubr.msk.bf16.mxu0 %vm2629_vm1, %v2628_v24 }
 0x2d7   : > { %2390 = vmatprep.subr.bf16.mxu0 %v2628_v24 }
 0x2dd   : > { %2381 = vmatmul.mubr.msk.bf16.vlgmr.msra.gmra.mrb[12].mxu0 %vm864_vm2, %v2836_v41 }
 0x2de   : > { %2392 = vmatprep.mubr.msk.bf16.mxu0 %vm2629_vm1, %v2628_v24 }
 0x3a0   : > { %v905_v51 = vpop.f32.mrb[4].mxu0 }
 0x3a1   : > { %v906_v52 = vadd.f32 %v905_v51, %v849_v50  ;;  %v2364_v53 = vpop.f32.mrb[5].mxu0 }
 0x3a2   : > { %v908_v54 = vpop.f32.mrb[6].mxu0 }
 0x3a3   : > { %v2365_v55 = vpop.f32.mrb[7].mxu0  ;;  %v1059_v56 = vsel %vm1058_vm3, %v906_v52, -inf }
 0x3a4   : > { %1060 = vmax.xlane.f32.xlu0 %v1059_v56 }
 0x3a6   : > { %v1003_v58 = vpop.f32.mrb[0].mxu1 }
 0x3a7   : > { %v1004_v60 = vadd.f32 %v1003_v58, %v851_v57  ;;  %v2376_v61 = vpop.f32.mrb[1].mxu1 }
 0x3a8   : > { %v954_v62 = vpop.f32.mrb[8].mxu0  ;;  %v1006_v63 = vpop.f32.mrb[2].mxu1 }
 0x3a9   : > { %v955_v0 = vadd.f32 %v954_v62, %v850_v59  ;;  %v2370_v1 = vpop.f32.mrb[9].mxu0  ;;  %v2377_v2 = vpop.f32.mrb[3].mxu1  ;;  %v1065_v3 = vsel %vm1058_vm3, %v1004_v60, -inf }
 0x3aa   : > { %v957_v4 = vpop.f32.mrb[10].mxu0  ;;  %1066 = vmax.xlane.f32.xlu0 %v1065_v3 }
 0x3ab   : > { %v2371_v5 = vpop.f32.mrb[11].mxu0  ;;  %v1062_v6 = vsel %vm1058_vm3, %v955_v0, -inf }
 0x3ac   : > { %1063 = vmax.xlane.f32.xlu1 %v1062_v6 }
 0x3b0   : > { %v1052_v8 = vpop.f32.mrb[12].mxu0 }
 0x3b1   : > { %v1053_v9 = vadd.f32 %v1052_v8, %v852_v7  ;;  %v2382_v10 = vpop.f32.mrb[13].mxu0 }
 0x3b2   : > { %v1055_v11 = vpop.f32.mrb[14].mxu0 }
 0x3b3   : > { %v2383_v12 = vpop.f32.mrb[15].mxu0  ;;  %v1068_v13 = vsel %vm1058_vm3, %v1053_v9, -inf }
 0x3b4   : > { %1069 = vmax.xlane.f32.xlu0 %v1068_v13 }
 0x3bd   : > { %1156 = vrot.lane.b32.xlu1 %v2829_v38, %s2631_s24 }
 0x3c1   : > { %1204 = vrot.lane.b32.xlu1 %v2833_v39, %s2631_s24 }
 0x3c5   : > { %1252 = vrot.lane.b32.xlu1 %v2836_v41, %s2631_s24 }
 0x431   : > { %v1061_v14 = vpop.xlane.xlu0 %1060 }
 0x432   : > { %v1071_v15 = vsub.f32 %v906_v52, %v1061_v14 }
 0x434   : > { %v1075_v18 = vmul.f32 1.442695, %v1071_v15 }
 0x437   : > { %v1067_v16 = vpop.xlane.xlu0 %1066 }
 0x438   : > { %v1073_v17 = vsub.f32 %v1004_v60, %v1067_v16 }
 0x439   : > { %v1064_v19 = vpop.xlane.xlu1 %1063 }
 0x43a   : > { %v1079_v20 = vmul.f32 1.442695, %v1073_v17  ;;  %v1072_v21 = vsub.f32 %v955_v0, %v1064_v19 }
 0x43c   : > { %2556 = vpow2.f32 %v1079_v20  ;;  %v1077_v22 = vmul.f32 1.442695, %v1072_v21 }
 0x43d   : > { %2558 = vpow2.f32 %v1075_v18  ;;  %v1157_v23 = vpop.permute.xlu1 %1156 }
 0x43e   : > { %2560 = vpow2.f32 %v1077_v22  ;;  %v1162_v27 = vsel %vm1112_vm4, %v1157_v23, 0 }
 0x43f   : > { %2391 = vmatpush3.bf16.msra.mxu0 %v1162_v27 }
 0x440   : > { %2402 = vmatprep.subr.bf16.mxu0 %v2628_v24 }
 0x441   : > { %v1070_v37 = vpop.xlane.xlu0 %1069  ;;  %v1205_v45 = vpop.permute.xlu1 %1204 }
 0x442   : > { %v1074_v40 = vsub.f32 %v1053_v9, %v1070_v37  ;;  %v1210_v60 = vsel %vm1112_vm4, %v1205_v45, 0 }
 0x444   : > { %v1081_v42 = vmul.f32 1.442695, %v1074_v40 }
 0x445   : > { %v1253_v46 = vpop.permute.xlu1 %1252 }
 0x446   : > { %v2557_v29 = vpop.eup %2556  ;;  %2562 = vpow2.f32 %v1081_v42  ;;  %v1258_v57 = vsel %vm1112_vm4, %v1253_v46, 0 }
 0x447   : > { %v2559_v30 = vpop.eup %2558  ;;  %v1089_v32 = vsel %vm1058_vm3, %v2557_v29, 0.0 }
 0x448   : > { %v2561_v33 = vpop.eup %2560  ;;  %1090 = vadd.xlane.f32.xlu0 %v1089_v32  ;;  %v1083_v36 = vsel %vm1058_vm3, %v2559_v30, 0.0  ;;  %v853_v32 = vld [vmem:[%s2864_s8 + $0x20] sm:$0xff] }
 0x449   : > { %v1086_v34 = vsel %vm1058_vm3, %v2561_v33, 0.0 }
 0x44a   : > { %1087 = vadd.xlane.f32.xlu1 %v1086_v34 }
 0x44c   : > { %1084 = vadd.xlane.f32.xlu0 %v1083_v36 }
 0x450   : > { %v2563_v43 = vpop.eup %2562 }
 0x451   : > { %v1092_v44 = vsel %vm1058_vm3, %v2563_v43, 0.0 }
 0x45b   : > { %1352 = vrot.lane.b32.xlu1 %v2829_v38, %s2632_s25 }
 0x462   : > { %1107 = vrot.lane.b32.xlu0 %v2827_v35, %s2631_s24 }
 0x466   : > { %1302 = vrot.lane.b32.xlu0 %v2827_v35, %s2632_s25 }
 0x46a   : > { %1300 = vrot.lane.b32.xlu0 %v2827_v35, %s2633_s30 }
 0x46e   : > { %1402 = vrot.lane.b32.xlu0 %v2833_v39, %s2632_s25 }
 0x472   : > { %1400 = vrot.lane.b32.xlu0 %v2833_v39, %s2633_s30 }
 0x47f   : > { %1093 = vadd.xlane.f32.xlu1 %v1092_v44 }
 0x490   : > { %1350 = vrot.lane.b32.xlu1 %v2829_v38, %s2633_s30 }
 0x494   : > { %1452 = vrot.lane.b32.xlu1 %v2836_v41, %s2632_s25 }
 0x498   : > { %1450 = vrot.lane.b32.xlu1 %v2836_v41, %s2633_s30 }
 0x4d5   : > { %v1091_v47 = vpop.xlane.xlu0 %1090 }
 0x4d7   : > { %v1088_v48 = vpop.xlane.xlu1 %1087 }
 0x4d8   : > { %2564 = vrcp.f32 %v1088_v48 }
 0x4d9   : > { %v1085_v49 = vpop.xlane.xlu0 %1084 }
 0x4da   : > { %2566 = vrcp.f32 %v1085_v49 }
 0x4db   : > { %2568 = vrcp.f32 %v1091_v47  ;;  %v1353_v5 = vpop.permute.xlu1 %1352 }
 0x4dc   : > { %v1358_v11 = vsel %vm864_vm2, %v1353_v5, 0 }
 0x4dd   : > { %v1108_v50 = vpop.permute.xlu0 %1107 }
 0x4de   : > { %v1114_v51 = vsel %vm1112_vm4, %v1108_v50, 0 }
 0x4df   : > { %2385 = vmatpush3.bf16.msra.mxu1 %v1114_v51 }
 0x4e0   : > { %2396 = vmatprep.subr.bf16.mxu1 %v2628_v24 }
 0x4e1   : > { %v1303_v62 = vpop.permute.xlu0 %1302 }
 0x4e2   : > { %v2565_v52 = vpop.eup %2564  ;;  %v1308_v1 = vsel %vm864_vm2, %v1303_v62, 0 }
 0x4e3   : > { %v1100_v53 = vmul.f32 %v2565_v52, %v2561_v33 }
 0x4e4   : > { %v2567_v54 = vpop.eup %2566 }
 0x4e5   : > { %v1099_v55 = vmul.f32 %v2567_v54, %v2559_v30  ;;  %v1104_v56 = vpack.c.bf16 %v1100_v53, %v1100_v53  ;;  %v2569_v59 = vpop.eup %2568  ;;  %v1301_v0 = vpop.permute.xlu0 %1300  ;;  %v854_v54 = vld [vmem:[%s2864_s8 + $0x28] sm:$0xff] }
 0x4e6   : > { %v1101_v61 = vmul.f32 %v2569_v59, %v2557_v29 }
 0x4e7   : > { %2393 = vmatmul.mubr.msk.bf16.vlgmr.msra.gmra.mrb[16].mxu0 %vm1058_vm3, %v1104_v56  ;;  %v1103_v58 = vpack.c.bf16 %v1099_v55, %v1099_v55 }
 0x4e8   : > { %2403 = vmatpush3.bf16.msra.mxu0 %v1258_v57  ;;  %2404 = vmatprep.mubr.msk.bf16.mxu0 %vm2629_vm1, %v2628_v24  ;;  %v1105_v63 = vpack.c.bf16 %v1101_v61, %v1101_v61  ;;  %v856_v61 = vld [vmem:[%s2864_s8 + $0x38] sm:$0xff] }
 0x4e9   : > { %2387 = vmatmul.mubr.msk.bf16.vlgmr.msra.gmra.mrb[4].mxu1 %vm1058_vm3, %v1103_v58  ;;  %2414 = vmatprep.subr.bf16.mxu0 %v2628_v24  ;;  %v1403_v2 = vpop.permute.xlu0 %1402 }
 0x4ea   : > { %2397 = vmatpush3.bf16.msra.mxu1 %v1210_v60  ;;  %2398 = vmatprep.mubr.msk.bf16.mxu1 %vm2629_vm1, %v2628_v24  ;;  %v1408_v3 = vsel %vm864_vm2, %v1403_v2, 0 }
 0x4eb   : > { %2408 = vmatprep.subr.bf16.mxu1 %v2628_v24 }
 0x4ed   : > { %v1401_v4 = vpop.permute.xlu0 %1400 }
 0x4f1   : > { %2399 = vmatmul.mubr.msk.bf16.vlgmr.msra.gmra.mrb[8].mxu1 %vm1058_vm3, %v1105_v63 }
 0x4f2   : > { %2410 = vmatprep.mubr.msk.bf16.mxu1 %vm2629_vm1, %v2628_v24 }
 0x4f3   : > { %2409 = vmatpush3.bf16.xpose.msra.mxu1 %v1308_v1 }
 0x4f4   : > { %2420 = vmatprep.subr.bf16.mxu1 %v2628_v24 }
 0x4fa   : > { %2411 = vmatmul.mubr.msk.bf16.vlgmr.msra.gmra.mrb[12].mxu1 %vm864_vm2, %v1301_v0 }
 0x4fb   : > { %2421 = vmatpush3.bf16.xpose.msra.mxu1 %v1408_v3  ;;  %2422 = vmatprep.mubr.msk.bf16.mxu1 %vm2629_vm1, %v2628_v24 }
 0x4fc   : > { %2432 = vmatprep.subr.bf16.mxu1 %v2628_v24 }
 0x502   : > { %2423 = vmatmul.mubr.msk.bf16.vlgmr.msra.gmra.mrb[16].mxu1 %vm864_vm2, %v1401_v4 }
 0x503   : > { %2434 = vmatprep.mubr.msk.bf16.mxu1 %vm2629_vm1, %v2628_v24 }
 0x50c   : > { %v1094_v6 = vpop.xlane.xlu1 %1093 }
 0x50d   : > { %2570 = vrcp.f32 %v1094_v6 }
 0x510   : > { %v1351_v10 = vpop.permute.xlu1 %1350 }
 0x514   : > { %v1453_v12 = vpop.permute.xlu1 %1452 }
 0x515   : > { %v1458_v13 = vsel %vm864_vm2, %v1453_v12, 0 }
 0x517   : > { %v2571_v7 = vpop.eup %2570 }
 0x518   : > { %v1102_v8 = vmul.f32 %v2571_v7, %v2563_v43  ;;  %v1451_v14 = vpop.permute.xlu1 %1450  ;;  %v855_v43 = vld [vmem:[%s2864_s8 + $0x30] sm:$0xff]  ;;  %s656_s8 = scalar_lea.vmem %s3102_s17, %s2767_s19 }
 0x51a   : > { %v1106_v9 = vpack.c.bf16 %v1102_v8, %v1102_v8 }
 0x51c   : > { %2405 = vmatmul.mubr.msk.bf16.vlgmr.msra.gmra.mrb[20].mxu0 %vm1058_vm3, %v1106_v9 }
 0x51d   : > { %2415 = vmatpush3.bf16.xpose.msra.mxu0 %v1358_v11  ;;  %2416 = vmatprep.mubr.msk.bf16.mxu0 %vm2629_vm1, %v2628_v24 }
 0x51e   : > { %2426 = vmatprep.subr.bf16.mxu0 %v2628_v24 }
 0x524   : > { %2417 = vmatmul.mubr.msk.bf16.vlgmr.msra.gmra.mrb[24].mxu0 %vm864_vm2, %v1351_v10 }
 0x525   : > { %2427 = vmatpush3.bf16.xpose.msra.mxu0 %v1458_v13  ;;  %2428 = vmatprep.mubr.msk.bf16.mxu0 %vm2629_vm1, %v2628_v24 }
 0x526   : > { %2438 = vmatprep.subr.bf16.mxu0 %v2628_v24 }
 0x52c   : > { %2429 = vmatmul.mubr.msk.bf16.vlgmr.msra.gmra.mrb[28].mxu0 %vm864_vm2, %v1451_v14 }
 0x52d   : > { %2440 = vmatprep.mubr.msk.bf16.mxu0 %vm2629_vm1, %v2628_v24 }
 0x5ba   : > { %v2934_v15 = vpop.f32.mrb[16].mxu0 }
 0x5bb   : > { %v2394_v16 = vpop.f32.mrb[17].mxu0 }
 0x5bc   : > { %v2936_v17 = vpop.f32.mrb[4].mxu1  ;;  %v1201_v18 = vpop.f32.mrb[18].mxu0 }
 0x5bd   : > { %v2388_v19 = vpop.f32.mrb[5].mxu1  ;;  %v2395_v20 = vpop.f32.mrb[19].mxu0 }
 0x5be   : > { %v1153_v21 = vpop.f32.mrb[6].mxu1 }
 0x5bf   : > { %v2389_v22 = vpop.f32.mrb[7].mxu1 }
 0x5c4   : > { %v2938_v23 = vpop.f32.mrb[8].mxu1 }
 0x5c5   : > { %v2400_v27 = vpop.f32.mrb[9].mxu1 }
 0x5c6   : > { %v1249_v29 = vpop.f32.mrb[10].mxu1 }
 0x5c7   : > { %v2401_v30 = vpop.f32.mrb[11].mxu1 }
 0x5cd   : > { %v1344_v33 = vpop.f32.mrb[12].mxu1 }
 0x5ce   : > { %v1345_v34 = vadd.f32 %v1344_v33, %v853_v32  ;;  %v2412_v36 = vpop.f32.mrb[13].mxu1 }
 0x5cf   : > { %v1347_v37 = vpop.f32.mrb[14].mxu1 }
 0x5d0   : > { %v2413_v40 = vpop.f32.mrb[15].mxu1  ;;  %v1500_v42 = vsel %vm1058_vm3, %v1345_v34, -inf }
 0x5d1   : > { %1501 = vmax.xlane.f32.xlu0 %v1500_v42 }
 0x5d5   : > { %v1444_v44 = vpop.f32.mrb[16].mxu1 }
 0x5d6   : > { %v1445_v45 = vadd.f32 %v1444_v44, %v855_v43  ;;  %v2424_v46 = vpop.f32.mrb[17].mxu1 }
 0x5d7   : > { %v1447_v47 = vpop.f32.mrb[18].mxu1 }
 0x5d8   : > { %v2425_v48 = vpop.f32.mrb[19].mxu1  ;;  %v1506_v49 = vsel %vm1058_vm3, %v1445_v45, -inf }
 0x5d9   : > { %1507 = vmax.xlane.f32.xlu0 %v1506_v49 }
 0x5ef   : > { %v2944_v50 = vpop.f32.mrb[20].mxu0 }
 0x5f0   : > { %v2406_v51 = vpop.f32.mrb[21].mxu0 }
 0x5f1   : > { %v1297_v52 = vpop.f32.mrb[22].mxu0 }
 0x5f2   : > { %v2407_v53 = vpop.f32.mrb[23].mxu0 }
 0x5f7   : > { %v1394_v55 = vpop.f32.mrb[24].mxu0 }
 0x5f8   : > { %v1395_v56 = vadd.f32 %v1394_v55, %v854_v54  ;;  %v2418_v57 = vpop.f32.mrb[25].mxu0 }
 0x5f9   : > { %v1397_v58 = vpop.f32.mrb[26].mxu0 }
 0x5fa   : > { %v2419_v59 = vpop.f32.mrb[27].mxu0  ;;  %v1503_v60 = vsel %vm1058_vm3, %v1395_v56, -inf }
 0x5fb   : > { %1504 = vmax.xlane.f32.xlu1 %v1503_v60 }
 0x5ff   : > { %v1494_v62 = vpop.f32.mrb[28].mxu0 }
 0x600   : > { %v1495_v63 = vadd.f32 %v1494_v62, %v856_v61  ;;  %v2430_v0 = vpop.f32.mrb[29].mxu0  ;;  %v2536_v61 = vld [vmem:[%s3094_s9] sm:$0xff]  }
 0x601   : > { %v1497_v1 = vpop.f32.mrb[30].mxu0 }
 0x602   : > { %v2431_v2 = vpop.f32.mrb[31].mxu0  ;;  %v1509_v3 = vsel %vm1058_vm3, %v1495_v63, -inf }
 0x603   : > { %1510 = vmax.xlane.f32.xlu0 %v1509_v3 }
 0x65e   : > { %v1502_v4 = vpop.xlane.xlu0 %1501 }
 0x65f   : > { %v1512_v5 = vsub.f32 %v1345_v34, %v1502_v4 }
 0x661   : > { %v1516_v6 = vmul.f32 1.442695, %v1512_v5 }
 0x663   : > { %2572 = vpow2.f32 %v1516_v6  ;;  %v2537_v6 = vld [vmem:[%s3094_s9 + $0x8] sm:$0xff]  }
 0x666   : > { %v1508_v7 = vpop.xlane.xlu0 %1507 }
 0x667   : > { %v1514_v8 = vsub.f32 %v1445_v45, %v1508_v7 }
 0x669   : > { %v1520_v9 = vmul.f32 1.442695, %v1514_v8 }
 0x66b   : > { %2574 = vpow2.f32 %v1520_v9 }
 0x66d   : > { %v2573_v10 = vpop.eup %2572 }
 0x66e   : > { %v1524_v11 = vsel %vm1058_vm3, %v2573_v10, 0.0 }
 0x66f   : > { %1525 = vadd.xlane.f32.xlu0 %v1524_v11 }
 0x675   : > { %v2575_v12 = vpop.eup %2574 }
 0x676   : > { %v1530_v13 = vsel %vm1058_vm3, %v2575_v12, 0.0 }
 0x677   : > { %1531 = vadd.xlane.f32.xlu0 %v1530_v13 }
 0x688   : > { %v1505_v14 = vpop.xlane.xlu1 %1504 }
 0x689   : > { %v1513_v16 = vsub.f32 %v1395_v56, %v1505_v14 }
 0x68b   : > { %v1518_v18 = vmul.f32 1.442695, %v1513_v16 }
 0x68d   : > { %2576 = vpow2.f32 %v1518_v18  ;;  %1548 = vrot.lane.b32.xlu0 %v2827_v35, %s2634_s29 }
 0x690   : > { %v1511_v21 = vpop.xlane.xlu0 %1510 }
 0x691   : > { %v1515_v22 = vsub.f32 %v1495_v63, %v1511_v21 }
 0x693   : > { %v1522_v27 = vmul.f32 1.442695, %v1515_v22 }
 0x695   : > { %2578 = vpow2.f32 %v1522_v27 }
 0x697   : > { %v2577_v19 = vpop.eup %2576 }
 0x698   : > { %v1527_v20 = vsel %vm1058_vm3, %v2577_v19, 0.0 }
 0x699   : > { %1528 = vadd.xlane.f32.xlu1 %v1527_v20 }
 0x69f   : > { %v2579_v29 = vpop.eup %2578 }
 0x6a0   : > { %v1533_v30 = vsel %vm1058_vm3, %v2579_v29, 0.0 }
 0x6aa   : > { %1596 = vrot.lane.b32.xlu1 %v2829_v38, %s2634_s29 }
 0x6ae   : > { %1644 = vrot.lane.b32.xlu1 %v2833_v39, %s2634_s29 }
 0x6d2   : > { %1534 = vadd.xlane.f32.xlu1 %v1533_v30 }
 0x6e3   : > { %1692 = vrot.lane.b32.xlu1 %v2836_v41, %s2634_s29 }
 0x6fc   : > { %v1526_v32 = vpop.xlane.xlu0 %1525 }
 0x6fd   : > { %2580 = vrcp.f32 %v1526_v32 }
 0x704   : > { %v1532_v35 = vpop.xlane.xlu0 %1531 }
 0x705   : > { %2582 = vrcp.f32 %v1532_v35 }
 0x707   : > { %v2581_v33 = vpop.eup %2580 }
 0x708   : > { %v1540_v34 = vmul.f32 %v2581_v33, %v2573_v10  ;;  %v1549_v36 = vpop.permute.xlu0 %1548 }
 0x709   : > { %v1554_v38 = vsel %vm1112_vm4, %v1549_v36, 0 }
 0x70a   : > { %2433 = vmatpush3.bf16.msra.mxu1 %v1554_v38  ;;  %v1544_v39 = vpack.c.bf16 %v1540_v34, %v1540_v34 }
 0x70b   : > { %2444 = vmatprep.subr.bf16.mxu1 %v2628_v24 }
 0x70d   : > { %2435 = vmatmul.mubr.msk.bf16.vlgmr.msra.gmra.mrb[20].mxu1 %vm1058_vm3, %v1544_v39 }
 0x70e   : > { %2446 = vmatprep.mubr.msk.bf16.mxu1 %vm2629_vm1, %v2628_v24 }
 0x70f   : > { %v2583_v41 = vpop.eup %2582 }
 0x710   : > { %v1542_v43 = vmul.f32 %v2583_v41, %v2575_v12 }
 0x712   : > { %v1546_v47 = vpack.c.bf16 %v1542_v43, %v1542_v43 }
 0x726   : > { %v1529_v37 = vpop.xlane.xlu1 %1528 }
 0x727   : > { %2584 = vrcp.f32 %v1529_v37 }
 0x72a   : > { %v1597_v40 = vpop.permute.xlu1 %1596 }
 0x72b   : > { %v1602_v42 = vsel %vm1112_vm4, %v1597_v40, 0 }
 0x72c   : > { %2439 = vmatpush3.bf16.msra.mxu0 %v1602_v42 }
 0x72d   : > { %2450 = vmatprep.subr.bf16.mxu0 %v2628_v24 }
 0x72e   : > { %v1645_v44 = vpop.permute.xlu1 %1644 }
 0x72f   : > { %v1650_v45 = vsel %vm1112_vm4, %v1645_v44, 0 }
 0x730   : > { %2445 = vmatpush3.bf16.msra.mxu1 %v1650_v45 }
 0x731   : > { %v2585_v46 = vpop.eup %2584  ;;  %2456 = vmatprep.subr.bf16.mxu1 %v2536_v61 }
 0x732   : > { %v1541_v48 = vmul.f32 %v2585_v46, %v2577_v19 }
 0x733   : > { %2447 = vmatmul.mubr.msk.bf16.vlgmr.msra.gmra.mrb[24].mxu1 %vm1058_vm3, %v1546_v47 }
 0x734   : > { %v1545_v49 = vpack.c.bf16 %v1541_v48, %v1541_v48  ;;  %2457 = vmatpush3.bf16.msra.mxu1 %v2536_v61 }
 0x735   : > { %2458 = vmatprep.subr.bf16.mxu1 %v2537_v6 }
 0x736   : > { %2441 = vmatmul.mubr.msk.bf16.vlgmr.msra.gmra.mrb[32].mxu0 %vm1058_vm3, %v1545_v49 }
 0x737   : > { %2452 = vmatprep.mubr.msk.bf16.mxu0 %vm2629_vm1, %v2628_v24 }
 0x738   : > { %2459 = vmatpush3.bf16.msra.mxu1 %v2537_v6 }
 0x75f   : > { %v1535_v51 = vpop.xlane.xlu1 %1534 }
 0x760   : > { %2586 = vrcp.f32 %v1535_v51 }
 0x763   : > { %v1693_v52 = vpop.permute.xlu1 %1692 }
 0x764   : > { %v1698_v53 = vsel %vm1112_vm4, %v1693_v52, 0 }
 0x765   : > { %2451 = vmatpush3.bf16.msra.mxu0 %v1698_v53 }
 0x76a   : > { %v2587_v54 = vpop.eup %2586 }
 0x76b   : > { %v1543_v55 = vmul.f32 %v2587_v54, %v2579_v29 }
 0x76d   : > { %v1547_v56 = vpack.c.bf16 %v1543_v55, %v1543_v55 }
 0x76f   : > { %2453 = vmatmul.mubr.msk.bf16.vlgmr.msra.gmra.mrb[36].mxu0 %vm1058_vm3, %v1547_v56 }
 0x7e0   : > { %v1590_v57 = vpop.f32.mrb[20].mxu1 }
 0x7e1   : > { %v2436_v58 = vpop.f32.mrb[21].mxu1 }
 0x7e2   : > { %v1593_v59 = vpop.f32.mrb[22].mxu1 }
 0x7e3   : > { %v2437_v60 = vpop.f32.mrb[23].mxu1 }
 0x806   : > { %v1686_v24 = vpop.f32.mrb[24].mxu1 }
 0x807   : > { %v2448_v62 = vpop.f32.mrb[25].mxu1 }
 0x808   : > { %v1689_v63 = vpop.f32.mrb[26].mxu1  ;;  %v2539_v62 = vld [vmem:[%s3098_s13 + $0x8] sm:$0xff]  }
 0x809   : > { %v1638_v0 = vpop.f32.mrb[32].mxu0  ;;  %v2449_v1 = vpop.f32.mrb[27].mxu1  ;;  %v2540_v63 = vld [vmem:[%s3100_s15] sm:$0xff]  }
 0x80a   : > { %v2524_v2 = vpack.i.bf16 %v1638_v0, %v1590_v57  ;;  %v2442_v3 = vpop.f32.mrb[33].mxu0  ;;  %v2541_v0 = vld [vmem:[%s3100_s15 + $0x8] sm:$0xff]   ;;  %2472 = vmatprep.subr.bf16.mxu1 %v2540_v63 }
 0x80b   : > { %v1641_v4 = vpop.f32.mrb[34].mxu0 }
 0x80c   : > { %v2443_v5 = vpop.f32.mrb[35].mxu0  ;;  %2525 = vrot.lane.b32.xlu0 %v2524_v2, %s2635_s1 }
 0x842   : > { %v1734_v7 = vpop.f32.mrb[36].mxu0 }
 0x843   : > { %v2529_v8 = vpack.i.bf16 %v1734_v7, %v1686_v24  ;;  %v2454_v9 = vpop.f32.mrb[37].mxu0  ;;  %v2538_v24 = vld [vmem:[%s3098_s13] sm:$0xff]  }
 0x844   : > { %v1737_v10 = vpop.f32.mrb[38].mxu0  ;;  %2464 = vmatprep.subr.bf16.mxu0 %v2538_v24 }
 0x845   : > { %v2455_v11 = vpop.f32.mrb[39].mxu0  ;;  %2530 = vrot.lane.b32.xlu1 %v2529_v8, %s2635_s1  ;;  %2465 = vmatpush3.bf16.msra.mxu0 %v2538_v24 }
 0x846   : > { %2466 = vmatprep.subr.bf16.mxu0 %v2539_v62 }
 0x849   : > { %2467 = vmatpush3.bf16.msra.mxu0 %v2539_v62 }
 0x87e   : > { %v2526_v12 = vpop.permute.xlu0 %2525 }
 0x87f   : > { %v2528_v13 = vunpack.i.h.bf16 %v2526_v12  ;;  %v2527_v14 = vunpack.i.l.bf16 %v2526_v12 }
 0x881   : > { %v1757_v16 = vsel %vm864_vm2, %v2934_v15, %v2528_v13  ;;  %v1756_v18 = vsel %vm864_vm2, %v2936_v17, %v2527_v14  ;;  %v2274_v15 = vld [vmem:[%s3095_s10] ss:$0 sm:$0xff] }
 0x882   : > { %v1760_v19 = vpack.c.bf16 %v1757_v16, %v1756_v18  ;;  %v2279_v14 = vld [vmem:[%s3096_s11] ss:$0 sm:$0xff] }
 0x884   : > { %2460 = vmatprep.mubr.msk.bf16.mxu1 %vm695_vm0, %v1760_v19 }
 0x8b7   : > { %v2531_v20 = vpop.permute.xlu1 %2530 }
 0x8b8   : > { %v2533_v21 = vunpack.i.h.bf16 %v2531_v20  ;;  %v2532_v22 = vunpack.i.l.bf16 %v2531_v20 }
 0x8ba   : > { %v1759_v27 = vsel %vm864_vm2, %v2944_v50, %v2533_v21  ;;  %v1758_v29 = vsel %vm864_vm2, %v2938_v23, %v2532_v22  ;;  %v2280_v22 = vld [vmem:[%s3097_s12] ss:$0 sm:$0xff] }
 0x8bb   : > { %v1761_v30 = vpack.c.bf16 %v1759_v27, %v1758_v29 }
 0x8bd   : > { %2461 = vmatmul.mubr.msk.bf16.vlgmr.msra.gmra.mrb[28].mxu1 %vm695_vm0, %v1761_v30 }
 0x8be   : > { %2473 = vmatpush3.bf16.msra.mxu1 %v2540_v63 }
 0x8bf   : > { %2474 = vmatprep.subr.bf16.mxu1 %v2541_v0 }
 0x8c2   : > { %2475 = vmatpush3.bf16.msra.mxu1 %v2541_v0 }
 0x990   : > { %v2462_v17 = vpop.f32.mrb[28].mxu1 }
 0x991   : > { %v1825_v32 = vpop.f32.mrb[29].mxu1  ;;  %v1834_v35 = vadd.f32 %v2462_v17, %v2274_v15 }
 0x992   : > { %v1826_v33 = vadd.f32 %v2274_v15, %v1825_v32  ;;  %v2463_v34 = vpop.f32.mrb[30].mxu1 }
 0x993   : > { %v1828_v36 = vpop.f32.mrb[31].mxu1  ;;  %v2995_v39 = vadd.f32 %v1834_v35, %v2782_v26  ;;  %v1837_v23 = vadd.f32 %v2463_v34, %v2274_v15 }
 0x994   : > { %v2992_v38 = vadd.f32 %v1826_v33, %v2780_v25  ;;  %v1829_v50 = vadd.f32 %v2274_v15, %v1828_v36 }
 0x995   : > { %v3005_v42 = vadd.f32 %v1837_v23, %v2790_v31  ;;  %v1852_v25 = vsel %vm695_vm0, %v2995_v39, 0.0 }
 0x996   : > { %v2998_v37 = vadd.f32 %v1829_v50, %v2784_v28  ;;  %v1846_v41 = vsel %vm695_vm0, %v2992_v38, 0.0 }
 0x997   : > { %1847 = vadd.xlane.f32.xlu0 %v1846_v41  ;;  %v1855_v26 = vsel %vm695_vm0, %v3005_v42, 0.0  ;;  %v2542_v41 = vld [vmem:[%s3100_s15 + $0x10] sm:$0xff]  }
 0x998   : > { %v1849_v40 = vsel %vm695_vm0, %v2998_v37, 0.0  ;;  %2476 = vmatprep.subr.bf16.mxu1 %v2542_v41 }
 0x999   : > { %1850 = vadd.xlane.f32.xlu1 %v1849_v40  ;;  %2477 = vmatpush3.bf16.msra.mxu1 %v2542_v41  ;;  %v2543_v40 = vld [vmem:[%s3100_s15 + $0x18] sm:$0xff]  }
 0x99a   : > { %2478 = vmatprep.subr.bf16.mxu1 %v2543_v40 }
 0x99b   : > { %1853 = vadd.xlane.f32.xlu0 %v1852_v25  ;;  %v2544_v25 = vld [vmem:[%s3100_s15 + $0x20] sm:$0xff]  }
 0x99d   : > { %2479 = vmatpush3.bf16.msra.mxu1 %v2543_v40 }
 0x99e   : > { %2480 = vmatprep.subr.bf16.mxu1 %v2544_v25 }
 0x99f   : > { %1856 = vadd.xlane.f32.xlu0 %v1855_v26  ;;  %v2545_v26 = vld [vmem:[%s3100_s15 + $0x28] sm:$0xff]  }
 0x9a1   : > { %2481 = vmatpush3.bf16.msra.mxu1 %v2544_v25 }
 0x9a2   : > { %2482 = vmatprep.subr.bf16.mxu1 %v2545_v26 }
 0x9a5   : > { %2483 = vmatpush3.bf16.msra.mxu1 %v2545_v26 }
 0xa24   : > { %v1848_v28 = vpop.xlane.xlu0 %1847 }
 0xa25   : > { %v1858_v43 = vmul.f32 0.03125, %v1848_v28  ;;  %v2546_v28 = vld [vmem:[%s3100_s15 + $0x30] sm:$0xff]  }
 0xa26   : > { %v1851_v44 = vpop.xlane.xlu1 %1850  ;;  %2484 = vmatprep.subr.bf16.mxu1 %v2546_v28 }
 0xa27   : > { %v1862_v45 = vsub.f32 %v2992_v38, %v1858_v43  ;;  %v1859_v46 = vmul.f32 0.03125, %v1851_v44  ;;  %2485 = vmatpush3.bf16.msra.mxu1 %v2546_v28  ;;  %v2547_v43 = vld [vmem:[%s3100_s15 + $0x38] sm:$0xff]   ;;  %v2281_v44 = vld [vmem:[%s3099_s14] ss:$0 sm:$0xff] }
 0xa28   : > { %v1854_v47 = vpop.xlane.xlu0 %1853  ;;  %2486 = vmatprep.subr.bf16.mxu1 %v2547_v43 }
 0xa29   : > { %v1863_v48 = vsub.f32 %v2998_v37, %v1859_v46  ;;  %v1860_v49 = vmul.f32 0.03125, %v1854_v47  ;;  %v1866_v31 = vmul.f32 %v1862_v45, %v1862_v45 }
 0xa2b   : > { %v1864_v51 = vsub.f32 %v2995_v39, %v1860_v49  ;;  %v1870_v52 = vsel %vm695_vm0, %v1866_v31, 0.0  ;;  %v1867_v53 = vmul.f32 %v1863_v48, %v1863_v48  ;;  %2487 = vmatpush3.bf16.msra.mxu1 %v2547_v43 }
 0xa2c   : > { %1871 = vadd.xlane.f32.xlu0 %v1870_v52  ;;  %v1857_v54 = vpop.xlane.xlu0 %1856 }
 0xa2d   : > { %v1861_v55 = vmul.f32 0.03125, %v1857_v54  ;;  %v1873_v56 = vsel %vm695_vm0, %v1867_v53, 0.0  ;;  %v1868_v57 = vmul.f32 %v1864_v51, %v1864_v51 }
 0xa2e   : > { %1874 = vadd.xlane.f32.xlu1 %v1873_v56 }
 0xa2f   : > { %v1865_v58 = vsub.f32 %v3005_v42, %v1861_v55  ;;  %v1876_v59 = vsel %vm695_vm0, %v1868_v57, 0.0 }
 0xa30   : > { %1877 = vadd.xlane.f32.xlu0 %v1876_v59 }
 0xa31   : > { %v1869_v60 = vmul.f32 %v1865_v58, %v1865_v58 }
 0xa33   : > { %v1879_v61 = vsel %vm695_vm0, %v1869_v60, 0.0 }
 0xa34   : > { %1880 = vadd.xlane.f32.xlu1 %v1879_v61 }
 0xab9   : > { %v1872_v1 = vpop.xlane.xlu0 %1871 }
 0xaba   : > { %v1882_v2 = vmul.f32 0.03125, %v1872_v1 }
 0xabb   : > { %v1875_v3 = vpop.xlane.xlu1 %1874 }
 0xabc   : > { %v1886_v4 = vadd.f32 1e-05, %v1882_v2  ;;  %v1883_v5 = vmul.f32 0.03125, %v1875_v3 }
 0xabd   : > { %v1878_v6 = vpop.xlane.xlu0 %1877 }
 0xabe   : > { %2588 = vrsqrt.f32 %v1886_v4  ;;  %v1887_v7 = vadd.f32 1e-05, %v1883_v5  ;;  %v1884_v8 = vmul.f32 0.03125, %v1878_v6 }
 0xac0   : > { %2590 = vrsqrt.f32 %v1887_v7  ;;  %v1888_v9 = vadd.f32 1e-05, %v1884_v8 }
 0xac1   : > { %v1881_v10 = vpop.xlane.xlu1 %1880 }
 0xac2   : > { %2592 = vrsqrt.f32 %v1888_v9  ;;  %v1885_v11 = vmul.f32 0.03125, %v1881_v10  ;;  %v2286_v10 = vld [vmem:[%s3101_s16] ss:$0 sm:$0xff] }
 0xac4   : > { %v1889_v12 = vadd.f32 1e-05, %v1885_v11 }
 0xac6   : > { %2594 = vrsqrt.f32 %v1889_v12 }
 0xac8   : > { %v2589_v13 = vpop.eup %2588 }
 0xac9   : > { %v1894_v16 = vmul.f32 %v2589_v13, %v1862_v45 }
 0xaca   : > { %v2591_v18 = vpop.eup %2590 }
 0xacb   : > { %v1895_v19 = vmul.f32 %v2591_v18, %v1863_v48  ;;  %v1904_v20 = vmul.f32 %v2279_v14, %v1894_v16 }
 0xacc   : > { %v2593_v21 = vpop.eup %2592 }
 0xacd   : > { %v1896_v27 = vmul.f32 %v2593_v21, %v1864_v51  ;;  %v1905_v29 = vmul.f32 %v2279_v14, %v1895_v19  ;;  %v1914_v30 = vadd.f32 %v2280_v22, %v1904_v20 }
 0xacf   : > { %v1915_v15 = vadd.f32 %v2280_v22, %v1905_v29  ;;  %v1906_v32 = vmul.f32 %v2279_v14, %v1896_v27 }
 0xad0   : > { %v2595_v17 = vpop.eup %2594 }
 0xad1   : > { %v1897_v35 = vmul.f32 %v2595_v17, %v1865_v58  ;;  %v1918_v33 = vpack.c.bf16 %v1915_v15, %v1914_v30  ;;  %v1916_v36 = vadd.f32 %v2280_v22, %v1906_v32 }
 0xad3   : > { %v1907_v34 = vmul.f32 %v2279_v14, %v1897_v35  ;;  %2468 = vmatprep.mubr.msk.bf16.mxu0 %vm695_vm0, %v1918_v33 }
 0xad5   : > { %v1917_v50 = vadd.f32 %v2280_v22, %v1907_v34 }
 0xad7   : > { %v1919_v23 = vpack.c.bf16 %v1917_v50, %v1916_v36 }
 0xad9   : > { %2469 = vmatmul.mubr.msk.bf16.vlgmr.msra.gmra.mrb[40].mxu0 %vm695_vm0, %v1919_v23 }
 0xbac   : > { %v2470_v45 = vpop.f32.mrb[40].mxu0 }
 0xbad   : > { %v1992_v46 = vadd.f32 %v2470_v45, %v2281_v44  ;;  %v1983_v47 = vpop.f32.mrb[41].mxu0 }
 0xbae   : > { %v1984_v48 = vadd.f32 %v2281_v44, %v1983_v47  ;;  %v2471_v49 = vpop.f32.mrb[42].mxu0 }
 0xbaf   : > { %v2004_v31 = vmul.f32 0.70710677, %v1992_v46  ;;  %v1995_v51 = vadd.f32 %v2471_v49, %v2281_v44  ;;  %v1986_v52 = vpop.f32.mrb[43].mxu0  ;;  %v2000_v62 = vmul.f32 0.5, %v1992_v46 }
 0xbb0   : > { %v2002_v53 = vmul.f32 0.70710677, %v1984_v48  ;;  %v1987_v54 = vadd.f32 %v2281_v44, %v1986_v52  ;;  %v1998_v1 = vmul.f32 0.5, %v1984_v48 }
 0xbb1   : > { %2596 = verf.f32 %v2004_v31  ;;  %v2005_v55 = vmul.f32 0.70710677, %v1995_v51  ;;  %v2001_v63 = vmul.f32 0.5, %v1995_v51 }
 0xbb2   : > { %2598 = verf.f32 %v2002_v53  ;;  %v2003_v56 = vmul.f32 0.70710677, %v1987_v54  ;;  %v1999_v2 = vmul.f32 0.5, %v1987_v54 }
 0xbb3   : > { %2600 = verf.f32 %v2005_v55 }
 0xbb4   : > { %2602 = verf.f32 %v2003_v56 }
 0xbbb   : > { %v2597_v57 = vpop.eup %2596 }
 0xbbc   : > { %v2599_v58 = vpop.eup %2598  ;;  %v2012_v59 = vadd.f32 1.0, %v2597_v57 }
 0xbbd   : > { %v2601_v60 = vpop.eup %2600  ;;  %v2010_v61 = vadd.f32 1.0, %v2599_v58 }
 0xbbe   : > { %v2603_v24 = vpop.eup %2602  ;;  %v2013_v0 = vadd.f32 1.0, %v2601_v60  ;;  %v2016_v4 = vmul.f32 %v2012_v59, %v2000_v62 }
 0xbbf   : > { %v2011_v3 = vadd.f32 1.0, %v2603_v24  ;;  %v2014_v6 = vmul.f32 %v2010_v61, %v1998_v1 }
 0xbc0   : > { %v2017_v5 = vmul.f32 %v2013_v0, %v2001_v63 }
 0xbc1   : > { %v2015_v7 = vmul.f32 %v2011_v3, %v1999_v2 }
 0xbc2   : > { %v2019_v8 = vpack.c.bf16 %v2017_v5, %v2016_v4 }
 0xbc3   : > { %v2018_v9 = vpack.c.bf16 %v2015_v7, %v2014_v6 }
 0xbc5   : > { %2488 = vmatprep.mubr.bf16.mxu1 %v2018_v9 }
 0xbc6   : > { %2489 = vmatmul.mubr.bf16.vlgmr.msra.gmra.mrb[32].mxu1 %v2019_v8 }
 0xc99   : > { %v2490_v11 = vpop.f32.mrb[32].mxu1 }
 0xc9a   : > { %v2125_v12 = vpop.f32.mrb[33].mxu1  ;;  %v2134_v16 = vadd.f32 %v2490_v11, %v2286_v10 }
 0xc9b   : > { %v2126_v13 = vadd.f32 %v2286_v10, %v2125_v12  ;;  %v2491_v14 = vpop.f32.mrb[34].mxu1 }
 0xc9c   : > { %v2128_v18 = vpop.f32.mrb[35].mxu1  ;;  %v2137_v20 = vadd.f32 %v2491_v14, %v2286_v10  ;;  %v2142_v27 = vadd.f32 %v2134_v16, %v2995_v39 }
 0xc9d   : > { %v2140_v19 = vadd.f32 %v2126_v13, %v2992_v38  ;;  %v2129_v21 = vadd.f32 %v2286_v10, %v2128_v18 }
 0xc9e   : > { %v2143_v29 = vadd.f32 %v2137_v20, %v3005_v42  ;;  %2146 = vst.msk [vmem:[%s656_s8 + $0x10] sm:$0xff] %vm695_vm0, %v2142_v27 }
 0xc9f   : > { %2144 = vst.msk [vmem:[%s656_s8] sm:$0xff] %vm695_vm0, %v2140_v19  ;;  %v2141_v22 = vadd.f32 %v2129_v21, %v2998_v37 }
 0xca0   : > { %2147 = vst.msk [vmem:[%s656_s8 + $0x18] sm:$0xff] %vm695_vm0, %v2143_v29 }
 0xca1   : > { %2145 = vst.msk [vmem:[%s656_s8 + $0x8] sm:$0xff] %vm695_vm0, %v2141_v22 }
 0xca2 PF: > { %s3112_s24 = sld [smem:[#allocation3_spill]]  ;;  %s3113_s25 = sld [smem:[#allocation4_spill]] }
 0xca3   : > { %p24_p9 = scmp.ge.s32.totalorder %s2743_s28, 4   ;;  %s3114_s26 = smov %s2743_s28 }
 0xca5   :  { %26 = sbr.rel (!%p24_p9) target bundleno = 6 (0x6), region = 167 }

</bundles_post_ra>
